<compile_context>
chip_gen: v7x
topology: tpu7x:2x2x1
jax: 0.10.0
libtpu: 0.0.40
codegen_flags: <defaults>
</compile_context>

<pallas_src>
import functools

import jax
import jax.numpy as jnp
from jax.experimental import pallas as pl
from jax.experimental.pallas import tpu as pltpu


# ----------------------------- Pallas kernel -------------------------------

def _fused_double_conv_kernel(x_ref, w1_ref, w2_ref, b1_ref, b2_ref,
                              o_ref, ypad_ref, *, h, w, cin, cout):
    """One image per grid step: out = conv2(conv1(x)) + conv1(x).

    Layouts (channels folded into the lane dim, all slices static):
      x_ref    : (1, h+2, (w+2)*cin)  bf16  spatially zero-padded input
      w1_ref   : (9, w*cin,  w*cout)  bf16  block-diagonal conv1 weights
      w2_ref   : (9, w*cout, w*cout)  bf16  block-diagonal conv2 weights
      b1_ref   : (1, w*cout)          f32   bias tiled over the w pixels
      b2_ref   : (1, w*cout)          f32
      o_ref    : (1, h, w*cout)       f32
      ypad_ref : (h+2, (w+2)*cout)    f32   VMEM scratch: conv1 output with a
                                            zero halo for conv2's 3x3 window
    """
    wco = w * cout
    xp = x_ref[0]                                            # (h+2, (w+2)*cin)

    # ---- conv1(x): 9 accumulating shifted matmuls, f32 accumulator --------
    acc1 = jnp.zeros((h, wco), jnp.float32)
    for ky in range(3):
        for kx in range(3):
            patch = xp[ky:ky + h, kx * cin:(kx + w) * cin]   # (h, w*cin) bf16
            acc1 += jnp.dot(patch, w1_ref[ky * 3 + kx],
                            preferred_element_type=jnp.float32)
    y = acc1 + b1_ref[...]                                   # (h, w*cout) f32

    # ---- zero-padded copy of y (halo for conv2), kept entirely in VMEM ----
    ypad_ref[...] = jnp.zeros_like(ypad_ref)
    ypad_ref[1:1 + h, cout:cout + wco] = y

    # ---- conv2(y) + bias2 + residual y ------------------------------------
    acc2 = jnp.zeros((h, wco), jnp.float32)
    for ky in range(3):
        for kx in range(3):
            patch = ypad_ref[ky:ky + h, kx * cout:(kx + w) * cout]
            acc2 += jnp.dot(patch.astype(jnp.bfloat16), w2_ref[ky * 3 + kx],
                            preferred_element_type=jnp.float32)
    o_ref[0] = acc2 + b2_ref[...] + y


# ------------------------------ JAX glue -----------------------------------

def _blockdiag_weight(w_hwio, width):
    """(3,3,Ci,Co) -> (9, width*Ci, width*Co) block-diagonal per-offset weights.

    big[k, u*Ci+i, v*Co+o] = (u == v) * w[ky, kx, i, o], so a lane-packed
    activation row (h, width*Ci) @ big[k] gives the lane-packed conv
    contribution (h, width*Co) of kernel offset k.
    """
    kh, kw, ci, co = w_hwio.shape
    wk = w_hwio.astype(jnp.bfloat16).reshape(kh * kw, ci, co)
    eye = jnp.eye(width, dtype=jnp.bfloat16)
    big = jnp.einsum("uv,kio->kuivo", eye, wk)               # (9, W, Ci, W, Co)
    return big.reshape(kh * kw, width * ci, width * co)


def init_params(key, in_features, out_features):
    k1, k2, k3, k4 = jax.random.split(key, 4)
    # HWIO weight layout (3, 3, Cin, Cout); deterministic small values.
    w1 = 0.1 * jax.random.normal(k1, (3, 3, in_features, out_features), jnp.float32)
    b1 = 0.1 * jax.random.normal(k2, (out_features,), jnp.float32)
    w2 = 0.1 * jax.random.normal(k3, (3, 3, out_features, out_features), jnp.float32)
    b2 = 0.1 * jax.random.normal(k4, (out_features,), jnp.float32)
    return {"w1": w1, "b1": b1, "w2": w2, "b2": b2}


@jax.jit
def rnn_resnet_forward(x_nchw, params):
    """forward(x): x = conv1(x); out = conv2(x) + x.  NCHW in / NCHW out."""
    n, cin, h, w = x_nchw.shape
    cout = params["w1"].shape[-1]
    wco = w * cout

    # NCHW -> NHWC, zero-pad spatially by 1, fold (W+2, Cin) into the lane dim.
    # (These boundary transposes exist only because the module contract is
    #  NCHW; NHWC callers could skip them.)
    x_nhwc = jnp.transpose(x_nchw, (0, 2, 3, 1)).astype(jnp.bfloat16)
    x_pad = jnp.pad(x_nhwc, ((0, 0), (1, 1), (1, 1), (0, 0)))
    x2 = x_pad.reshape(n, h + 2, (w + 2) * cin)              # (N, H+2, (W+2)*Cin)

    w1b = _blockdiag_weight(params["w1"], w)                 # (9, W*Cin,  W*Cout)
    w2b = _blockdiag_weight(params["w2"], w)                 # (9, W*Cout, W*Cout)
    b1t = jnp.tile(params["b1"].astype(jnp.float32), w).reshape(1, wco)
    b2t = jnp.tile(params["b2"].astype(jnp.float32), w).reshape(1, wco)

    kernel = functools.partial(_fused_double_conv_kernel,
                               h=h, w=w, cin=cin, cout=cout)

    flops = 2 * n * 9 * h * (w * cin * wco + wco * wco)
    bytes_accessed = (x2.size * 2 + w1b.size * 2 + w2b.size * 2
                      + (b1t.size + b2t.size) * 4 + n * h * wco * 4)

    out = pl.pallas_call(
        kernel,
        grid=(n,),
        in_specs=[
            pl.BlockSpec((1, h + 2, (w + 2) * cin), lambda i: (i, 0, 0)),
            pl.BlockSpec((9, w * cin, wco), lambda i: (0, 0, 0)),
            pl.BlockSpec((9, wco, wco), lambda i: (0, 0, 0)),
            pl.BlockSpec((1, wco), lambda i: (0, 0)),
            pl.BlockSpec((1, wco), lambda i: (0, 0)),
        ],
        out_specs=pl.BlockSpec((1, h, wco), lambda i: (i, 0, 0)),
        out_shape=jax.ShapeDtypeStruct((n, h, wco), jnp.float32),
        scratch_shapes=[pltpu.VMEM((h + 2, (w + 2) * cout), jnp.float32)],
        compiler_params=pltpu.CompilerParams(
            dimension_semantics=("parallel",),
            vmem_limit_bytes=64 * 1024 * 1024),
        cost_estimate=pl.CostEstimate(flops=int(flops), transcendentals=0,
                                      bytes_accessed=int(bytes_accessed)),
    )(x2, w1b, w2b, b1t, b2t)

    out_nhwc = out.reshape(n, h, w, cout)
    return jnp.transpose(out_nhwc, (0, 3, 1, 2))             # NCHW


# ------------------------- pure-JAX reference ------------------------------

def _ref_conv(x_nchw, w_hwio, b):
    w_oihw = jnp.transpose(w_hwio, (3, 2, 0, 1))
    y = jax.lax.conv_general_dilated(
        x_nchw, w_oihw, window_strides=(1, 1), padding="SAME",
        dimension_numbers=("NCHW", "OIHW", "NCHW"),
        precision=jax.lax.Precision.HIGHEST)
    return y + b.reshape(1, -1, 1, 1)


def _ref_forward(x_nchw, params):
    # Mirrors the kernel's quantization points: bf16 inputs/weights on the
    # MXU, f32 accumulation, f32 bias + residual.
    rb = lambda a: a.astype(jnp.bfloat16).astype(jnp.float32)
    y = _ref_conv(rb(x_nchw), rb(params["w1"]), params["b1"])
    return _ref_conv(rb(y), rb(params["w2"]), params["b2"]) + y


# --------------------------------- main -------------------------------------

if __name__ == "__main__":
    key = jax.random.PRNGKey(0)
    k_x, k_p = jax.random.split(key)

    in_features, out_features = 4, 8
    N, H, W = 2, 16, 16

    x = jax.random.normal(k_x, (N, in_features, H, W), jnp.float32)
    params = init_params(k_p, in_features, out_features)

    out = rnn_resnet_forward(x, params)
    out = jax.block_until_ready(out)

    ref = _ref_forward(x, params)
    assert out.shape == (N, out_features, H, W), out.shape
    assert jnp.allclose(out, ref, atol=2e-3, rtol=2e-3), float(
        jnp.max(jnp.abs(out - ref)))

    print("KERNEL_OK")
</pallas_src>

<mosaic_0001>
module attributes {stable_mosaic.version = 11 : i64} {
  func.func @_fused_double_conv_kernel(%arg0: i32, %arg1: memref<1x18x72xbf16, #tpu.memory_space<vmem>>, %arg2: memref<9x64x128xbf16, #tpu.memory_space<vmem>>, %arg3: memref<9x128x128xbf16, #tpu.memory_space<vmem>>, %arg4: memref<1x128xf32, #tpu.memory_space<vmem>>, %arg5: memref<1x128xf32, #tpu.memory_space<vmem>>, %arg6: memref<1x16x128xf32, #tpu.memory_space<vmem>>, %arg7: memref<18x144xf32, #tpu.memory_space<vmem>>) attributes {dimension_semantics = [#tpu.dimension_semantics<parallel>], iteration_bounds = array<i64: 2>, scalar_prefetch = 0 : i64, scratch_operands = 1 : i64, tpu.core_type = #tpu.core_type<tc>, window_params = [{transform_indices = @transform_0, window_bounds = array<i64: 1, 18, 72>}, {pipeline_mode = #tpu.pipeline_mode<synchronous>, transform_indices = @transform_1, window_bounds = array<i64: 9, 64, 128>}, {pipeline_mode = #tpu.pipeline_mode<synchronous>, transform_indices = @transform_2, window_bounds = array<i64: 9, 128, 128>}, {pipeline_mode = #tpu.pipeline_mode<synchronous>, transform_indices = @transform_3, window_bounds = array<i64: 1, 128>}, {pipeline_mode = #tpu.pipeline_mode<synchronous>, transform_indices = @transform_4, window_bounds = array<i64: 1, 128>}, {transform_indices = @transform_5, window_bounds = array<i64: 1, 16, 128>}]} {
    %c0 = arith.constant 0 : index
    %c0_0 = arith.constant 0 : index
    %c0_1 = arith.constant 0 : index
    %0 = vector.load %arg1[%c0, %c0_0, %c0_1] : memref<1x18x72xbf16, #tpu.memory_space<vmem>>, vector<1x18x72xbf16>
    %1 = vector.shape_cast %0 : vector<1x18x72xbf16> to vector<18x72xbf16>
    %cst = arith.constant 0.000000e+00 : f32
    %2 = vector.broadcast %cst : f32 to vector<16x128xf32>
    %3 = vector.extract_strided_slice %1 {offsets = [0, 0], sizes = [16, 64], strides = [1, 1]} : vector<18x72xbf16> to vector<16x64xbf16>
    %c0_2 = arith.constant 0 : index
    %c0_3 = arith.constant 0 : index
    %c0_4 = arith.constant 0 : index
    %4 = vector.load %arg2[%c0_2, %c0_3, %c0_4] : memref<9x64x128xbf16, #tpu.memory_space<vmem>>, vector<1x64x128xbf16>
    %5 = vector.shape_cast %4 : vector<1x64x128xbf16> to vector<64x128xbf16>
    %cst_5 = arith.constant dense<0.000000e+00> : vector<16x128xf32>
    %6 = tpu.matmul %3, %5, %cst_5 {dimension_numbers = #tpu.dot_dimension_numbers<[1], [0], [0], [1], [0, 0, 1, 1], [], []>} : vector<16x64xbf16>, vector<64x128xbf16>, vector<16x128xf32> -> vector<16x128xf32>
    %7 = arith.addf %2, %6 : vector<16x128xf32>
    %8 = vector.extract_strided_slice %1 {offsets = [0, 4], sizes = [16, 64], strides = [1, 1]} : vector<18x72xbf16> to vector<16x64xbf16>
    %c1 = arith.constant 1 : index
    %c0_6 = arith.constant 0 : index
    %c0_7 = arith.constant 0 : index
    %9 = vector.load %arg2[%c1, %c0_6, %c0_7] : memref<9x64x128xbf16, #tpu.memory_space<vmem>>, vector<1x64x128xbf16>
    %10 = vector.shape_cast %9 : vector<1x64x128xbf16> to vector<64x128xbf16>
    %cst_8 = arith.constant dense<0.000000e+00> : vector<16x128xf32>
    %11 = tpu.matmul %8, %10, %cst_8 {dimension_numbers = #tpu.dot_dimension_numbers<[1], [0], [0], [1], [0, 0, 1, 1], [], []>} : vector<16x64xbf16>, vector<64x128xbf16>, vector<16x128xf32> -> vector<16x128xf32>
    %12 = arith.addf %7, %11 : vector<16x128xf32>
    %13 = vector.extract_strided_slice %1 {offsets = [0, 8], sizes = [16, 64], strides = [1, 1]} : vector<18x72xbf16> to vector<16x64xbf16>
    %c2 = arith.constant 2 : index
    %c0_9 = arith.constant 0 : index
    %c0_10 = arith.constant 0 : index
    %14 = vector.load %arg2[%c2, %c0_9, %c0_10] : memref<9x64x128xbf16, #tpu.memory_space<vmem>>, vector<1x64x128xbf16>
    %15 = vector.shape_cast %14 : vector<1x64x128xbf16> to vector<64x128xbf16>
    %cst_11 = arith.constant dense<0.000000e+00> : vector<16x128xf32>
    %16 = tpu.matmul %13, %15, %cst_11 {dimension_numbers = #tpu.dot_dimension_numbers<[1], [0], [0], [1], [0, 0, 1, 1], [], []>} : vector<16x64xbf16>, vector<64x128xbf16>, vector<16x128xf32> -> vector<16x128xf32>
    %17 = arith.addf %12, %16 : vector<16x128xf32>
    %18 = vector.extract_strided_slice %1 {offsets = [1, 0], sizes = [16, 64], strides = [1, 1]} : vector<18x72xbf16> to vector<16x64xbf16>
    %c3 = arith.constant 3 : index
    %c0_12 = arith.constant 0 : index
    %c0_13 = arith.constant 0 : index
    %19 = vector.load %arg2[%c3, %c0_12, %c0_13] : memref<9x64x128xbf16, #tpu.memory_space<vmem>>, vector<1x64x128xbf16>
    %20 = vector.shape_cast %19 : vector<1x64x128xbf16> to vector<64x128xbf16>
    %cst_14 = arith.constant dense<0.000000e+00> : vector<16x128xf32>
    %21 = tpu.matmul %18, %20, %cst_14 {dimension_numbers = #tpu.dot_dimension_numbers<[1], [0], [0], [1], [0, 0, 1, 1], [], []>} : vector<16x64xbf16>, vector<64x128xbf16>, vector<16x128xf32> -> vector<16x128xf32>
    %22 = arith.addf %17, %21 : vector<16x128xf32>
    %23 = vector.extract_strided_slice %1 {offsets = [1, 4], sizes = [16, 64], strides = [1, 1]} : vector<18x72xbf16> to vector<16x64xbf16>
    %c4 = arith.constant 4 : index
    %c0_15 = arith.constant 0 : index
    %c0_16 = arith.constant 0 : index
    %24 = vector.load %arg2[%c4, %c0_15, %c0_16] : memref<9x64x128xbf16, #tpu.memory_space<vmem>>, vector<1x64x128xbf16>
    %25 = vector.shape_cast %24 : vector<1x64x128xbf16> to vector<64x128xbf16>
    %cst_17 = arith.constant dense<0.000000e+00> : vector<16x128xf32>
    %26 = tpu.matmul %23, %25, %cst_17 {dimension_numbers = #tpu.dot_dimension_numbers<[1], [0], [0], [1], [0, 0, 1, 1], [], []>} : vector<16x64xbf16>, vector<64x128xbf16>, vector<16x128xf32> -> vector<16x128xf32>
    %27 = arith.addf %22, %26 : vector<16x128xf32>
    %28 = vector.extract_strided_slice %1 {offsets = [1, 8], sizes = [16, 64], strides = [1, 1]} : vector<18x72xbf16> to vector<16x64xbf16>
    %c5 = arith.constant 5 : index
    %c0_18 = arith.constant 0 : index
    %c0_19 = arith.constant 0 : index
    %29 = vector.load %arg2[%c5, %c0_18, %c0_19] : memref<9x64x128xbf16, #tpu.memory_space<vmem>>, vector<1x64x128xbf16>
    %30 = vector.shape_cast %29 : vector<1x64x128xbf16> to vector<64x128xbf16>
    %cst_20 = arith.constant dense<0.000000e+00> : vector<16x128xf32>
    %31 = tpu.matmul %28, %30, %cst_20 {dimension_numbers = #tpu.dot_dimension_numbers<[1], [0], [0], [1], [0, 0, 1, 1], [], []>} : vector<16x64xbf16>, vector<64x128xbf16>, vector<16x128xf32> -> vector<16x128xf32>
    %32 = arith.addf %27, %31 : vector<16x128xf32>
    %33 = vector.extract_strided_slice %1 {offsets = [2, 0], sizes = [16, 64], strides = [1, 1]} : vector<18x72xbf16> to vector<16x64xbf16>
    %c6 = arith.constant 6 : index
    %c0_21 = arith.constant 0 : index
    %c0_22 = arith.constant 0 : index
    %34 = vector.load %arg2[%c6, %c0_21, %c0_22] : memref<9x64x128xbf16, #tpu.memory_space<vmem>>, vector<1x64x128xbf16>
    %35 = vector.shape_cast %34 : vector<1x64x128xbf16> to vector<64x128xbf16>
    %cst_23 = arith.constant dense<0.000000e+00> : vector<16x128xf32>
    %36 = tpu.matmul %33, %35, %cst_23 {dimension_numbers = #tpu.dot_dimension_numbers<[1], [0], [0], [1], [0, 0, 1, 1], [], []>} : vector<16x64xbf16>, vector<64x128xbf16>, vector<16x128xf32> -> vector<16x128xf32>
    %37 = arith.addf %32, %36 : vector<16x128xf32>
    %38 = vector.extract_strided_slice %1 {offsets = [2, 4], sizes = [16, 64], strides = [1, 1]} : vector<18x72xbf16> to vector<16x64xbf16>
    %c7 = arith.constant 7 : index
    %c0_24 = arith.constant 0 : index
    %c0_25 = arith.constant 0 : index
    %39 = vector.load %arg2[%c7, %c0_24, %c0_25] : memref<9x64x128xbf16, #tpu.memory_space<vmem>>, vector<1x64x128xbf16>
    %40 = vector.shape_cast %39 : vector<1x64x128xbf16> to vector<64x128xbf16>
    %cst_26 = arith.constant dense<0.000000e+00> : vector<16x128xf32>
    %41 = tpu.matmul %38, %40, %cst_26 {dimension_numbers = #tpu.dot_dimension_numbers<[1], [0], [0], [1], [0, 0, 1, 1], [], []>} : vector<16x64xbf16>, vector<64x128xbf16>, vector<16x128xf32> -> vector<16x128xf32>
    %42 = arith.addf %37, %41 : vector<16x128xf32>
    %43 = vector.extract_strided_slice %1 {offsets = [2, 8], sizes = [16, 64], strides = [1, 1]} : vector<18x72xbf16> to vector<16x64xbf16>
    %c8 = arith.constant 8 : index
    %c0_27 = arith.constant 0 : index
    %c0_28 = arith.constant 0 : index
    %44 = vector.load %arg2[%c8, %c0_27, %c0_28] : memref<9x64x128xbf16, #tpu.memory_space<vmem>>, vector<1x64x128xbf16>
    %45 = vector.shape_cast %44 : vector<1x64x128xbf16> to vector<64x128xbf16>
    %cst_29 = arith.constant dense<0.000000e+00> : vector<16x128xf32>
    %46 = tpu.matmul %43, %45, %cst_29 {dimension_numbers = #tpu.dot_dimension_numbers<[1], [0], [0], [1], [0, 0, 1, 1], [], []>} : vector<16x64xbf16>, vector<64x128xbf16>, vector<16x128xf32> -> vector<16x128xf32>
    %47 = arith.addf %42, %46 : vector<16x128xf32>
    %c0_30 = arith.constant 0 : index
    %c0_31 = arith.constant 0 : index
    %48 = vector.load %arg4[%c0_30, %c0_31] : memref<1x128xf32, #tpu.memory_space<vmem>>, vector<1x128xf32>
    %49 = vector.broadcast %48 : vector<1x128xf32> to vector<16x128xf32>
    %50 = arith.addf %47, %49 : vector<16x128xf32>
    %cst_32 = arith.constant 0.000000e+00 : f32
    %51 = vector.broadcast %cst_32 : f32 to vector<18x144xf32>
    %c0_33 = arith.constant 0 : index
    %c0_34 = arith.constant 0 : index
    %52 = vector.load %arg7[%c0_33, %c0_34] : memref<18x144xf32, #tpu.memory_space<vmem>>, vector<18x144xf32>
    tpu.vector_store %arg7[%c0_33, %c0_34], %51 {strides = array<i32>} : memref<18x144xf32, #tpu.memory_space<vmem>>, vector<18x144xf32>,
    %c1_35 = arith.constant 1 : index
    %c8_36 = arith.constant 8 : index
    %53 = vector.load %arg7[%c1_35, %c8_36] : memref<18x144xf32, #tpu.memory_space<vmem>>, vector<16x128xf32>
    tpu.vector_store %arg7[%c1_35, %c8_36], %50 {strides = array<i32>} : memref<18x144xf32, #tpu.memory_space<vmem>>, vector<16x128xf32>,
    %cst_37 = arith.constant 0.000000e+00 : f32
    %54 = vector.broadcast %cst_37 : f32 to vector<16x128xf32>
    %c0_38 = arith.constant 0 : index
    %c0_39 = arith.constant 0 : index
    %55 = vector.load %arg7[%c0_38, %c0_39] : memref<18x144xf32, #tpu.memory_space<vmem>>, vector<16x128xf32>
    %56 = arith.truncf %55 : vector<16x128xf32> to vector<16x128xbf16>
    %c0_40 = arith.constant 0 : index
    %c0_41 = arith.constant 0 : index
    %c0_42 = arith.constant 0 : index
    %57 = vector.load %arg3[%c0_40, %c0_41, %c0_42] : memref<9x128x128xbf16, #tpu.memory_space<vmem>>, vector<1x128x128xbf16>
    %58 = vector.shape_cast %57 : vector<1x128x128xbf16> to vector<128x128xbf16>
    %cst_43 = arith.constant dense<0.000000e+00> : vector<16x128xf32>
    %59 = tpu.matmul %56, %58, %cst_43 {dimension_numbers = #tpu.dot_dimension_numbers<[1], [0], [0], [1], [0, 0, 1, 1], [], []>} : vector<16x128xbf16>, vector<128x128xbf16>, vector<16x128xf32> -> vector<16x128xf32>
    %60 = arith.addf %54, %59 : vector<16x128xf32>
    %c0_44 = arith.constant 0 : index
    %c8_45 = arith.constant 8 : index
    %61 = vector.load %arg7[%c0_44, %c8_45] : memref<18x144xf32, #tpu.memory_space<vmem>>, vector<16x128xf32>
    %62 = arith.truncf %61 : vector<16x128xf32> to vector<16x128xbf16>
    %c1_46 = arith.constant 1 : index
    %c0_47 = arith.constant 0 : index
    %c0_48 = arith.constant 0 : index
    %63 = vector.load %arg3[%c1_46, %c0_47, %c0_48] : memref<9x128x128xbf16, #tpu.memory_space<vmem>>, vector<1x128x128xbf16>
    %64 = vector.shape_cast %63 : vector<1x128x128xbf16> to vector<128x128xbf16>
    %cst_49 = arith.constant dense<0.000000e+00> : vector<16x128xf32>
    %65 = tpu.matmul %62, %64, %cst_49 {dimension_numbers = #tpu.dot_dimension_numbers<[1], [0], [0], [1], [0, 0, 1, 1], [], []>} : vector<16x128xbf16>, vector<128x128xbf16>, vector<16x128xf32> -> vector<16x128xf32>
    %66 = arith.addf %60, %65 : vector<16x128xf32>
    %c0_50 = arith.constant 0 : index
    %c16 = arith.constant 16 : index
    %67 = vector.load %arg7[%c0_50, %c16] : memref<18x144xf32, #tpu.memory_space<vmem>>, vector<16x128xf32>
    %68 = arith.truncf %67 : vector<16x128xf32> to vector<16x128xbf16>
    %c2_51 = arith.constant 2 : index
    %c0_52 = arith.constant 0 : index
    %c0_53 = arith.constant 0 : index
    %69 = vector.load %arg3[%c2_51, %c0_52, %c0_53] : memref<9x128x128xbf16, #tpu.memory_space<vmem>>, vector<1x128x128xbf16>
    %70 = vector.shape_cast %69 : vector<1x128x128xbf16> to vector<128x128xbf16>
    %cst_54 = arith.constant dense<0.000000e+00> : vector<16x128xf32>
    %71 = tpu.matmul %68, %70, %cst_54 {dimension_numbers = #tpu.dot_dimension_numbers<[1], [0], [0], [1], [0, 0, 1, 1], [], []>} : vector<16x128xbf16>, vector<128x128xbf16>, vector<16x128xf32> -> vector<16x128xf32>
    %72 = arith.addf %66, %71 : vector<16x128xf32>
    %c1_55 = arith.constant 1 : index
    %c0_56 = arith.constant 0 : index
    %73 = vector.load %arg7[%c1_55, %c0_56] : memref<18x144xf32, #tpu.memory_space<vmem>>, vector<16x128xf32>
    %74 = arith.truncf %73 : vector<16x128xf32> to vector<16x128xbf16>
    %c3_57 = arith.constant 3 : index
    %c0_58 = arith.constant 0 : index
    %c0_59 = arith.constant 0 : index
    %75 = vector.load %arg3[%c3_57, %c0_58, %c0_59] : memref<9x128x128xbf16, #tpu.memory_space<vmem>>, vector<1x128x128xbf16>
    %76 = vector.shape_cast %75 : vector<1x128x128xbf16> to vector<128x128xbf16>
    %cst_60 = arith.constant dense<0.000000e+00> : vector<16x128xf32>
    %77 = tpu.matmul %74, %76, %cst_60 {dimension_numbers = #tpu.dot_dimension_numbers<[1], [0], [0], [1], [0, 0, 1, 1], [], []>} : vector<16x128xbf16>, vector<128x128xbf16>, vector<16x128xf32> -> vector<16x128xf32>
    %78 = arith.addf %72, %77 : vector<16x128xf32>
    %c1_61 = arith.constant 1 : index
    %c8_62 = arith.constant 8 : index
    %79 = vector.load %arg7[%c1_61, %c8_62] : memref<18x144xf32, #tpu.memory_space<vmem>>, vector<16x128xf32>
    %80 = arith.truncf %79 : vector<16x128xf32> to vector<16x128xbf16>
    %c4_63 = arith.constant 4 : index
    %c0_64 = arith.constant 0 : index
    %c0_65 = arith.constant 0 : index
    %81 = vector.load %arg3[%c4_63, %c0_64, %c0_65] : memref<9x128x128xbf16, #tpu.memory_space<vmem>>, vector<1x128x128xbf16>
    %82 = vector.shape_cast %81 : vector<1x128x128xbf16> to vector<128x128xbf16>
    %cst_66 = arith.constant dense<0.000000e+00> : vector<16x128xf32>
    %83 = tpu.matmul %80, %82, %cst_66 {dimension_numbers = #tpu.dot_dimension_numbers<[1], [0], [0], [1], [0, 0, 1, 1], [], []>} : vector<16x128xbf16>, vector<128x128xbf16>, vector<16x128xf32> -> vector<16x128xf32>
    %84 = arith.addf %78, %83 : vector<16x128xf32>
    %c1_67 = arith.constant 1 : index
    %c16_68 = arith.constant 16 : index
    %85 = vector.load %arg7[%c1_67, %c16_68] : memref<18x144xf32, #tpu.memory_space<vmem>>, vector<16x128xf32>
    %86 = arith.truncf %85 : vector<16x128xf32> to vector<16x128xbf16>
    %c5_69 = arith.constant 5 : index
    %c0_70 = arith.constant 0 : index
    %c0_71 = arith.constant 0 : index
    %87 = vector.load %arg3[%c5_69, %c0_70, %c0_71] : memref<9x128x128xbf16, #tpu.memory_space<vmem>>, vector<1x128x128xbf16>
    %88 = vector.shape_cast %87 : vector<1x128x128xbf16> to vector<128x128xbf16>
    %cst_72 = arith.constant dense<0.000000e+00> : vector<16x128xf32>
    %89 = tpu.matmul %86, %88, %cst_72 {dimension_numbers = #tpu.dot_dimension_numbers<[1], [0], [0], [1], [0, 0, 1, 1], [], []>} : vector<16x128xbf16>, vector<128x128xbf16>, vector<16x128xf32> -> vector<16x128xf32>
    %90 = arith.addf %84, %89 : vector<16x128xf32>
    %c2_73 = arith.constant 2 : index
    %c0_74 = arith.constant 0 : index
    %91 = vector.load %arg7[%c2_73, %c0_74] : memref<18x144xf32, #tpu.memory_space<vmem>>, vector<16x128xf32>
    %92 = arith.truncf %91 : vector<16x128xf32> to vector<16x128xbf16>
    %c6_75 = arith.constant 6 : index
    %c0_76 = arith.constant 0 : index
    %c0_77 = arith.constant 0 : index
    %93 = vector.load %arg3[%c6_75, %c0_76, %c0_77] : memref<9x128x128xbf16, #tpu.memory_space<vmem>>, vector<1x128x128xbf16>
    %94 = vector.shape_cast %93 : vector<1x128x128xbf16> to vector<128x128xbf16>
    %cst_78 = arith.constant dense<0.000000e+00> : vector<16x128xf32>
    %95 = tpu.matmul %92, %94, %cst_78 {dimension_numbers = #tpu.dot_dimension_numbers<[1], [0], [0], [1], [0, 0, 1, 1], [], []>} : vector<16x128xbf16>, vector<128x128xbf16>, vector<16x128xf32> -> vector<16x128xf32>
    %96 = arith.addf %90, %95 : vector<16x128xf32>
    %c2_79 = arith.constant 2 : index
    %c8_80 = arith.constant 8 : index
    %97 = vector.load %arg7[%c2_79, %c8_80] : memref<18x144xf32, #tpu.memory_space<vmem>>, vector<16x128xf32>
    %98 = arith.truncf %97 : vector<16x128xf32> to vector<16x128xbf16>
    %c7_81 = arith.constant 7 : index
    %c0_82 = arith.constant 0 : index
    %c0_83 = arith.constant 0 : index
    %99 = vector.load %arg3[%c7_81, %c0_82, %c0_83] : memref<9x128x128xbf16, #tpu.memory_space<vmem>>, vector<1x128x128xbf16>
    %100 = vector.shape_cast %99 : vector<1x128x128xbf16> to vector<128x128xbf16>
    %cst_84 = arith.constant dense<0.000000e+00> : vector<16x128xf32>
    %101 = tpu.matmul %98, %100, %cst_84 {dimension_numbers = #tpu.dot_dimension_numbers<[1], [0], [0], [1], [0, 0, 1, 1], [], []>} : vector<16x128xbf16>, vector<128x128xbf16>, vector<16x128xf32> -> vector<16x128xf32>
    %102 = arith.addf %96, %101 : vector<16x128xf32>
    %c2_85 = arith.constant 2 : index
    %c16_86 = arith.constant 16 : index
    %103 = vector.load %arg7[%c2_85, %c16_86] : memref<18x144xf32, #tpu.memory_space<vmem>>, vector<16x128xf32>
    %104 = arith.truncf %103 : vector<16x128xf32> to vector<16x128xbf16>
    %c8_87 = arith.constant 8 : index
    %c0_88 = arith.constant 0 : index
    %c0_89 = arith.constant 0 : index
    %105 = vector.load %arg3[%c8_87, %c0_88, %c0_89] : memref<9x128x128xbf16, #tpu.memory_space<vmem>>, vector<1x128x128xbf16>
    %106 = vector.shape_cast %105 : vector<1x128x128xbf16> to vector<128x128xbf16>
    %cst_90 = arith.constant dense<0.000000e+00> : vector<16x128xf32>
    %107 = tpu.matmul %104, %106, %cst_90 {dimension_numbers = #tpu.dot_dimension_numbers<[1], [0], [0], [1], [0, 0, 1, 1], [], []>} : vector<16x128xbf16>, vector<128x128xbf16>, vector<16x128xf32> -> vector<16x128xf32>
    %108 = arith.addf %102, %107 : vector<16x128xf32>
    %c0_91 = arith.constant 0 : index
    %c0_92 = arith.constant 0 : index
    %109 = vector.load %arg5[%c0_91, %c0_92] : memref<1x128xf32, #tpu.memory_space<vmem>>, vector<1x128xf32>
    %110 = vector.broadcast %109 : vector<1x128xf32> to vector<16x128xf32>
    %111 = arith.addf %108, %110 : vector<16x128xf32>
    %112 = arith.addf %111, %50 : vector<16x128xf32>
    %c0_93 = arith.constant 0 : index
    %c0_94 = arith.constant 0 : index
    %c0_95 = arith.constant 0 : index
    %113 = vector.load %arg6[%c0_93, %c0_94, %c0_95] : memref<1x16x128xf32, #tpu.memory_space<vmem>>, vector<1x16x128xf32>
    %114 = vector.shape_cast %113 : vector<1x16x128xf32> to vector<16x128xf32>
    %115 = vector.shape_cast %112 : vector<16x128xf32> to vector<1x16x128xf32>
    tpu.vector_store %arg6[%c0_93, %c0_94, %c0_95], %115 {strides = array<i32>} : memref<1x16x128xf32, #tpu.memory_space<vmem>>, vector<1x16x128xf32>,
    return
  }
  func.func @transform_0(%arg0: i32) -> (i32, i32, i32) {
    %c0_i32 = arith.constant 0 : i32
    %c0_i32_0 = arith.constant 0 : i32
    %c0_i32_1 = arith.constant 0 : i32
    return %arg0, %c0_i32, %c0_i32_0 : i32, i32, i32
  }
  func.func @transform_1(%arg0: i32) -> (i32, i32, i32) {
    %c0_i32 = arith.constant 0 : i32
    %c0_i32_0 = arith.constant 0 : i32
    %c0_i32_1 = arith.constant 0 : i32
    %c0_i32_2 = arith.constant 0 : i32
    return %c0_i32, %c0_i32_0, %c0_i32_1 : i32, i32, i32
  }
  func.func @transform_2(%arg0: i32) -> (i32, i32, i32) {
    %c0_i32 = arith.constant 0 : i32
    %c0_i32_0 = arith.constant 0 : i32
    %c0_i32_1 = arith.constant 0 : i32
    %c0_i32_2 = arith.constant 0 : i32
    return %c0_i32, %c0_i32_0, %c0_i32_1 : i32, i32, i32
  }
  func.func @transform_3(%arg0: i32) -> (i32, i32) {
    %c0_i32 = arith.constant 0 : i32
    %c0_i32_0 = arith.constant 0 : i32
    %c0_i32_1 = arith.constant 0 : i32
    return %c0_i32, %c0_i32_0 : i32, i32
  }
  func.func @transform_4(%arg0: i32) -> (i32, i32) {
    %c0_i32 = arith.constant 0 : i32
    %c0_i32_0 = arith.constant 0 : i32
    %c0_i32_1 = arith.constant 0 : i32
    return %c0_i32, %c0_i32_0 : i32, i32
  }
  func.func @transform_5(%arg0: i32) -> (i32, i32, i32) {
    %c0_i32 = arith.constant 0 : i32
    %c0_i32_0 = arith.constant 0 : i32
    %c0_i32_1 = arith.constant 0 : i32
    return %arg0, %c0_i32, %c0_i32_0 : i32, i32, i32
  }
}

</mosaic_0001>

<bundles_post_ra>
// kernel: tile.13
= control target key start
LH: loop header
LB: loop body
LE: loop exit
PB: predicated region body
PF: predicated region fallthrough
CT: control target
= control target key end

     0   :  { %s28_s0 = inlined_call_operand.vmem [shape: f32[8], index: 0, kind: input, shape index: {}]   ;;  %s29_s1 = inlined_call_operand.vmem [shape: f32[16,8], index: 1, kind: output, shape index: {}]  }
   0x1   :  { %v4_v0 = vld [vmem:[%s28_s0] ss:$0 sm:$0xff] }
   0x2   :  { %5 = vst [vmem:[%s29_s1] sm:$0xff] %v4_v0  ;;  %8 = vst [vmem:[%s29_s1 + $0x8] sm:$0xff] %v4_v0 }

// kernel: tile.14
= control target key start
LH: loop header
LB: loop body
LE: loop exit
PB: predicated region body
PF: predicated region fallthrough
CT: control target
= control target key end

     0   :  { %s167_s10 = smov 120   ;;  %s168_s11 = smov 104   ;;  %vm4_vm0 = vcmask 64512   ;;  %s253_s0 = inlined_call_operand.vmem [shape: f32[16,8], index: 0, kind: input, shape index: {}]   ;;  %s254_s1 = inlined_call_operand.hbm [shape: f32[1,128], index: 1, kind: output, shape index: {}]  }
   0x1   :  { %v112_v0 = vld [vmem:[%s253_s0 + $0xf] sm:$0x1]   ;;  %v114_v1 = vld [vmem:[%s253_s0 + $0xd] sm:$0x1]   ;;  %v113_v2 = vld [vmem:[%s253_s0 + $0xe] sm:$0x1]  }
   0x2   :  { %8 = vrot.lane.b32.xlu0 %v112_v0, %s167_s10  ;;  %20 = vrot.lane.b32.xlu1 %v114_v1, %s168_s11  ;;  %v115_v3 = vld [vmem:[%s253_s0 + $0xc] sm:$0x1]   ;;  %s169_s16 = smov 112   ;;  %s170_s17 = smov 96   ;;  %v116_v4 = vld [vmem:[%s253_s0 + $0xb] sm:$0x1]  }
   0x3   :  { %v117_v5 = vld [vmem:[%s253_s0 + $0xa] sm:$0x1]   ;;  %v3_v6 = vld [vmem:[%s253_s0] sm:$0x1]  }
   0x6   :  { %14 = vrot.lane.b32.xlu0 %v113_v2, %s169_s16  ;;  %26 = vrot.lane.b32.xlu1 %v115_v3, %s170_s17 }
   0x7   :  { %2 = vsyncpa [#allocation1], 0  ;;  %s171_s24 = smov 88   ;;  %s172_s25 = smov 80   ;;  %5 = vst.msk [vmem:[#allocation2] sm:$0x1] %vm4_vm0, %v3_v6  }
   0x8   :  { %v118_v7 = vld [vmem:[%s253_s0 + $0x9] sm:$0x1]   ;;  %v119_v8 = vld [vmem:[%s253_s0 + $0x8] sm:$0x1]   ;;  %s173_s30 = smov 72   ;;  %s174_s2 = smov 64  }
   0x9   :  { %v120_v9 = vld [vmem:[%s253_s0 + $0x7] sm:$0x1]   ;;  %v121_v10 = vld [vmem:[%s253_s0 + $0x6] sm:$0x1]   ;;  %s175_s7 = smov 56   ;;  %s176_s8 = smov 48  }
   0xa   :  { %32 = vrot.lane.b32.xlu0 %v116_v4, %s171_s24  ;;  %38 = vrot.lane.b32.xlu1 %v117_v5, %s172_s25  ;;  %v122_v11 = vld [vmem:[%s253_s0 + $0x5] sm:$0x1]   ;;  %v123_v12 = vld [vmem:[%s253_s0 + $0x4] sm:$0x1]   ;;  %s177_s13 = smov 40   ;;  %s178_s14 = smov 32  }
   0xb   :  { %v124_v13 = vld [vmem:[%s253_s0 + $0x3] sm:$0x1]   ;;  %v125_v14 = vld [vmem:[%s253_s0 + $0x2] sm:$0x1]   ;;  %s179_s19 = smov 24   ;;  %s180_s20 = smov 16  }
   0xc   :  { %v126_v15 = vld [vmem:[%s253_s0 + $0x1] sm:$0x1]   ;;  %s181_s0 = smov 8   ;;  %vm10_vm1 = vcmask 1048512   ;;  %vm16_vm2 = vcmask 982912   ;;  %vm22_vm3 = vcmask 917312  }
   0xd   :  { %vm28_vm4 = vcmask 851712   ;;  %vm34_vm5 = vcmask 786112   ;;  %vm40_vm6 = vcmask 720512   ;;  %vm46_vm7 = vcmask 654912   ;;  %s182_s23 = smov [#allocation0]  }
   0xe   :  { %44 = vrot.lane.b32.xlu0 %v118_v7, %s173_s30  ;;  %50 = vrot.lane.b32.xlu1 %v119_v8, %s174_s2  ;;  %vm52_vm8 = vcmask 589312   ;;  %vm58_vm9 = vcmask 523712   ;;  %vm64_vm10 = vcmask 458112   ;;  %vm70_vm11 = vcmask 392512   ;;  %s106_s24 = sshll.u32 %s182_s23, 4  ;;  %s107_s24 = int_to_ptr.vmem [resolvable:$true] %s106_s24 }
   0xf   :  { %vm76_vm12 = vcmask 326912   ;;  %vm82_vm13 = vcmask 261312   ;;  %vm88_vm14 = vcmask 195712   ;;  %vm94_vm15 = vcmask 130112   ;;  %s143_s25 = scalar_lea.vmem %s107_s24, 16  ;;  %s147_s26 = scalar_lea.vmem %s107_s24, 32 }
  0x10   :  { %p144_p0 = scmp.ne.s32.totalorder %s107_s24, %s143_s25  ;;  %p148_p1 = scmp.lt.s32.totalorder %s107_s24, %s107_s24 }
  0x11   :  { %p149_p2 = scmp.lt.s32.totalorder %s147_s26, %s143_s25 }
  0x12   :  { %56 = vrot.lane.b32.xlu0 %v120_v9, %s175_s7  ;;  %62 = vrot.lane.b32.xlu1 %v121_v10, %s176_s8 }
  0x13   :  { %p150_p3 = por %p149_p2, %p148_p1 }
  0x15   :  { %p151_p4 = pnand %p150_p3, %p144_p0 }
  0x16   :  { %68 = vrot.lane.b32.xlu0 %v122_v11, %s177_s13  ;;  %74 = vrot.lane.b32.xlu1 %v123_v12, %s178_s14 }
  0x1a   :  { %80 = vrot.lane.b32.xlu0 %v124_v13, %s179_s19  ;;  %86 = vrot.lane.b32.xlu1 %v125_v14, %s180_s20 }
  0x1e   :  { %92 = vrot.lane.b32.xlu0 %v126_v15, %s181_s0 }
  0x74   :  { %v9_v16 = vpop.permute.xlu0 %8   ;;  %v21_v17 = vpop.permute.xlu1 %20  }
  0x75   :  { %11 = vst.msk [vmem:[#allocation2] sm:$0x1] %vm10_vm1, %v9_v16  }
  0x78   :  { %v15_v18 = vpop.permute.xlu0 %14   ;;  %v27_v19 = vpop.permute.xlu1 %26  }
  0x79   :  { %17 = vst.msk [vmem:[#allocation2] sm:$0x1] %vm16_vm2, %v15_v18  }
  0x7a   :  { %23 = vst.msk [vmem:[#allocation2] sm:$0x1] %vm22_vm3, %v21_v17  }
  0x7b   :  { %29 = vst.msk [vmem:[#allocation2] sm:$0x1] %vm28_vm4, %v27_v19  }
  0x7c   :  { %v33_v20 = vpop.permute.xlu0 %32   ;;  %v39_v21 = vpop.permute.xlu1 %38  }
  0x7d   :  { %35 = vst.msk [vmem:[#allocation2] sm:$0x1] %vm34_vm5, %v33_v20  }
  0x7e   :  { %41 = vst.msk [vmem:[#allocation2] sm:$0x1] %vm40_vm6, %v39_v21  }
  0x80   :  { %v45_v22 = vpop.permute.xlu0 %44   ;;  %v51_v23 = vpop.permute.xlu1 %50  }
  0x81   :  { %47 = vst.msk [vmem:[#allocation2] sm:$0x1] %vm46_vm7, %v45_v22  }
  0x82   :  { %53 = vst.msk [vmem:[#allocation2] sm:$0x1] %vm52_vm8, %v51_v23  }
  0x84   :  { %v57_v24 = vpop.permute.xlu0 %56   ;;  %v63_v25 = vpop.permute.xlu1 %62  }
  0x85   :  { %59 = vst.msk [vmem:[#allocation2] sm:$0x1] %vm58_vm9, %v57_v24  }
  0x86   :  { %65 = vst.msk [vmem:[#allocation2] sm:$0x1] %vm64_vm10, %v63_v25  }
  0x88   :  { %v69_v26 = vpop.permute.xlu0 %68   ;;  %v75_v27 = vpop.permute.xlu1 %74  }
  0x89   :  { %71 = vst.msk [vmem:[#allocation2] sm:$0x1] %vm70_vm11, %v69_v26  }
  0x8a   :  { %77 = vst.msk [vmem:[#allocation2] sm:$0x1] %vm76_vm12, %v75_v27  }
  0x8c   :  { %v81_v28 = vpop.permute.xlu0 %80   ;;  %v87_v29 = vpop.permute.xlu1 %86  }
  0x8d   :  { %83 = vst.msk [vmem:[#allocation2] sm:$0x1] %vm82_vm13, %v81_v28  }
  0x8e   :  { %89 = vst.msk [vmem:[#allocation2] sm:$0x1] %vm88_vm14, %v87_v29  }
  0x90   :  { %v93_v30 = vpop.permute.xlu0 %92  }
  0x91   :  { %95 = vst.msk [vmem:[#allocation2] sm:$0x1] %vm94_vm15, %v93_v30  }
  0x98   :  { %v99_v31 = vld [vmem:[#allocation2] sm:$0x1] }
  0x99   :  { %101 = vst [vmem:[#allocation0] sm:$0x1] %v99_v31 }
  0x9a   :  { %154 = shalt.err (!%p151_p4)
}
  0x9b   :  { %s155_s29 = scalar_lea.hbm %s254_s1, 16 }
  0x9c   :  { %p156_p5 = scmp.ne.s32.totalorder %s254_s1, %s155_s29  ;;  %p159_p6 = scmp.lt.u32.totalorder %s155_s29, %s254_s1 }
  0x9e   :  { %p161_p7 = pnand %p159_p6, %p156_p5 }
  0xa0   :  { %164 = shalt.err (!%p161_p7)
}
  0xa1   :  { %109 = dma.vmem_to_hbm [thread:$0]  %s107_s24, 16, %s254_s1, [#allocation1]  }
  0xa2   :  { %165 = dma.done.wait [#allocation1], 16  }
  0xa3   :  { %166 = vsyncadd [#allocation1], 4294967280 }
  0xa4   :  { %111 = vsyncpa [#allocation1], 1 }

// kernel: rnn_resnet_forward.1
= control target key start
LH: loop header
LB: loop body
LE: loop exit
PB: predicated region body
PF: predicated region fallthrough
CT: control target
= control target key end

     0   :  { %10 = vsyncpa [#allocation4], 0  ;;  %s3852_s0 = inlined_call_operand.hbm [shape: bf16[2,18,72], index: 0, kind: input, shape index: {}]   ;;  %s3853_s1 = inlined_call_operand.hbm [shape: bf16[9,64,128], index: 1, kind: input, shape index: {}]   ;;  %s3854_s2 = inlined_call_operand.hbm [shape: bf16[9,128,128], index: 2, kind: input, shape index: {}]   ;;  %s3855_s3 = inlined_call_operand.hbm [shape: f32[1,128], index: 3, kind: input, shape index: {}]   ;;  %s3856_s4 = inlined_call_operand.hbm [shape: f32[1,128], index: 4, kind: input, shape index: {}]   ;;  %s3857_s5 = inlined_call_operand.hbm [shape: f32[2,16,128], index: 5, kind: output, shape index: {}]  }
   0x1   :  { %12 = vsyncpa [#allocation4 + $0x1], 0 }
   0x2   :  { %13 = vsyncpa [#allocation7], 0 }
   0x3   :  { %14 = vsyncpa [#allocation10], 0 }
   0x4   :  { %15 = vsyncpa [#allocation5], 0 }
   0x5   :  { %17 = vsyncpa [#allocation5 + $0x1], 0  ;;  %s3346_s18 = smov 0   ;;  %s3348_s19 = smov 0  }
   0x6   :  { %s3350_s20 = smov 0   ;;  %s3352_s21 = smov 0  }
   0x7 LB: > { %s3367_s22 = sadd.s32 4294967295, %s3299_s21   ;;  %s2319_s23 = sadd.s32 4294967294, %s3299_s21   ;;  %s3299_s21 = sphi %s3352_s21, %s3882_s21   ;;  %s3295_s20 = sphi %s3350_s20, %s3881_s20   ;;  %s3291_s19 = sphi %s3348_s19, %s3880_s19   ;;  %s3287_s18 = sphi %s3346_s18, %s3879_s18  }
   0x8   : > { %p43_p0 = scmp.ne.s32.totalorder %s3291_s19, %s3287_s18  ;;  %p3858_p1 = scmp.eq.s32.totalorder %s3367_s22, 0 }
   0x9   : > { %p157_p3 = scmp.eq.s32.totalorder %s2319_s23, 1  ;;  %p2320_p5 = scmp.ge.s32.totalorder %s3299_s21, 1 }
   0xa   : > { %p3376_p4 = por %p3858_p1, %p43_p0  ;;  %p164_p7 = scmp.lt.s32.totalorder %s3299_s21, 3 }
   0xb   : > { %p3381_p6 = por %p157_p3, %p43_p0  ;;  %s3301_s27 = smov [#allocation6]  }
   0xc   : > { %s3862_s24 = scalar_select %p3376_p4, 1, 0 }
   0xd   : > { %s3863_s25 = scalar_select %p3381_p6, 1, 0 }
   0xe   : > { %p3386_p8 = pnand %p2320_p5, %p164_p7  ;;  %s176_s28 = sshll.u32 %s3301_s27, 4  ;;  %s3390_s28 = int_to_ptr.vmem [resolvable:$true] %s176_s28 }
   0xf   : > { %s3302_s30 = smov [#allocation9]   ;;  %s3303_s7 = smov [#allocation8]  }
  0x10   : > { %s3864_s26 = scalar_select %p3386_p8, 1, 0 }
  0x11   : > { %p2897_p9 = pneg %p3386_p8  ;;  %s203_s6 = sshll.u32 %s3302_s30, 4  ;;  %s3401_s6 = int_to_ptr.vmem [resolvable:$true] %s203_s6 }
  0x12   : > { %s3403_s8 = sshll.u32 %s3303_s7, 4  ;;  %s3083_s11 = scalar_lea.hbm %s3853_s1, 4608  ;;  %s190_s8 = int_to_ptr.vmem [resolvable:$true] %s3403_s8 }
  0x13   : > { %p3397_p11 = pnand %p2897_p9, %p3858_p1  ;;  %p3084_p12 = scmp.ne.s32.totalorder %s3853_s1, %s3083_s11 }
  0x14   : > { %p3090_p5 = scmp.lt.u32.totalorder %s3083_s11, %s3853_s1 }
  0x15   : > { %p3413_p13 = pneg %p3397_p11 }
  0x17   : > { %p3086_p0 = pnand %p3413_p13, %p3084_p12 }
  0x19   : > { %p3087_p3 = pneg %p3086_p0 }
  0x1b   : > { %p3092_p7 = pnand %p3090_p5, %p3087_p3 }
  0x1d   : > { %3095 = shalt.err (!%p3092_p7)
}
  0x1e   : > { %s3096_s17 = scalar_lea.vmem %s3390_s28, 4608  ;;  %p3104_p2 = scmp.lt.s32.totalorder %s3390_s28, %s3390_s28 }
  0x1f   : > { %p3097_p9 = scmp.ne.s32.totalorder %s3390_s28, %s3096_s17  ;;  %p3105_p6 = scmp.lt.s32.totalorder %s3096_s17, %s3096_s17 }
  0x21   : > { %p3099_p10 = pnand %p3097_p9, %p3413_p13  ;;  %p3106_p12 = por %p3105_p6, %p3104_p2 }
  0x23   : > { %p3100_p1 = pneg %p3099_p10 }
  0x25   : > { %p3107_p0 = pnand %p3106_p12, %p3100_p1 }
  0x27   : > { %3110 = shalt.err (!%p3107_p0)
}
  0x28   : > { %s3861_s23 = smov 64   ;;  %s3305_s27 = smov 4  }
  0x29   : > { %2900 = dma.hbm_to_vmem [thread:$0]  (!%p3397_p11), %s3853_s1, 4608, %s3390_s28, [#allocation7], %s3861_s23, %s3861_s23, %s3305_s27  }
  0x2a   : > { %s3111_s11 = scalar_lea.hbm %s3855_s3, 16 }
  0x2b   : > { %p3112_p1 = scmp.ne.s32.totalorder %s3855_s3, %s3111_s11  ;;  %p3118_p10 = scmp.lt.u32.totalorder %s3111_s11, %s3855_s3 }
  0x2d   : > { %p3114_p2 = pnand %p3112_p1, %p3413_p13 }
  0x2f   : > { %p3115_p6 = pneg %p3114_p2 }
  0x31   : > { %p3120_p3 = pnand %p3118_p10, %p3115_p6 }
  0x33   : > { %3123 = shalt.err (!%p3120_p3)
}
  0x34   : > { %s3124_s28 = scalar_lea.vmem %s3401_s6, 16  ;;  %s3131_s17 = scalar_lea.vmem %s3401_s6, 32 }
  0x35   : > { %p3125_p5 = scmp.ne.s32.totalorder %s3401_s6, %s3124_s28  ;;  %p3132_p12 = scmp.lt.s32.totalorder %s3401_s6, %s3401_s6 }
  0x36   : > { %p3133_p0 = scmp.lt.s32.totalorder %s3131_s17, %s3124_s28 }
  0x37   : > { %p3127_p7 = pnand %p3125_p5, %p3413_p13 }
  0x38   : > { %p3134_p1 = por %p3133_p0, %p3132_p12 }
  0x39   : > { %p3128_p9 = pneg %p3127_p7 }
  0x3b   : > { %p3135_p2 = pnand %p3134_p1, %p3128_p9 }
  0x3d   : > { %3138 = shalt.err (!%p3135_p2)
}
  0x3e   : > { %2906 = dma.hbm_to_vmem [thread:$0]  (!%p3397_p11), %s3855_s3, 16, %s3401_s6, [#allocation10]  }
  0x3f   : > { %s3139_s11 = scalar_lea.hbm %s3854_s2, 9216 }
  0x40   : > { %p3140_p6 = scmp.ne.s32.totalorder %s3854_s2, %s3139_s11  ;;  %p3146_p5 = scmp.lt.u32.totalorder %s3139_s11, %s3854_s2 }
  0x42   : > { %p3142_p10 = pnand %p3140_p6, %p3413_p13 }
  0x44   : > { %p3143_p3 = pneg %p3142_p10 }
  0x46   : > { %p3148_p7 = pnand %p3146_p5, %p3143_p3 }
  0x48   : > { %3151 = shalt.err (!%p3148_p7)
}
  0x49   : > { %s3152_s28 = scalar_lea.vmem %s190_s8, 9216  ;;  %p3160_p1 = scmp.lt.s32.totalorder %s190_s8, %s190_s8 }
  0x4a   : > { %p3153_p9 = scmp.ne.s32.totalorder %s190_s8, %s3152_s28  ;;  %p3161_p2 = scmp.lt.s32.totalorder %s3152_s28, %s3152_s28 }
  0x4c   : > { %p3155_p12 = pnand %p3153_p9, %p3413_p13  ;;  %p3162_p4 = por %p3161_p2, %p3160_p1 }
  0x4e   : > { %p3156_p0 = pneg %p3155_p12 }
  0x50   : > { %p3163_p8 = pnand %p3162_p4, %p3156_p0 }
  0x52   : > { %3166 = shalt.err (!%p3163_p8)
}
  0x53   : > { %2903 = dma.hbm_to_vmem [thread:$0]  (!%p3397_p11), %s3854_s2, 9216, %s190_s8, [#allocation7], %s3861_s23, %s3861_s23, %s3305_s27  }
  0x54   : > { %s3306_s30 = smov [#allocation11]   ;;  %s3167_s11 = scalar_lea.hbm %s3856_s4, 16 }
  0x55   : > { %s214_s7 = sshll.u32 %s3306_s30, 4  ;;  %p3168_p4 = scmp.ne.s32.totalorder %s3856_s4, %s3167_s11  ;;  %s215_s7 = int_to_ptr.vmem [resolvable:$true] %s214_s7 }
  0x56   : > { %p3174_p10 = scmp.lt.u32.totalorder %s3167_s11, %s3856_s4 }
  0x57   : > { %p3170_p8 = pnand %p3168_p4, %p3413_p13 }
  0x59   : > { %p3171_p6 = pneg %p3170_p8 }
  0x5b   : > { %p3176_p3 = pnand %p3174_p10, %p3171_p6 }
  0x5d   : > { %3179 = shalt.err (!%p3176_p3)
}
  0x5e   : > { %s3180_s8 = scalar_lea.vmem %s215_s7, 16  ;;  %s3187_s28 = scalar_lea.vmem %s215_s7, 32 }
  0x5f   : > { %p3181_p5 = scmp.ne.s32.totalorder %s215_s7, %s3180_s8  ;;  %p3188_p12 = scmp.lt.s32.totalorder %s215_s7, %s215_s7 }
  0x60   : > { %p3189_p0 = scmp.lt.s32.totalorder %s3187_s28, %s3180_s8 }
  0x61   : > { %p3183_p7 = pnand %p3181_p5, %p3413_p13 }
  0x62   : > { %p3190_p1 = por %p3189_p0, %p3188_p12 }
  0x63   : > { %p3184_p9 = pneg %p3183_p7 }
  0x65   : > { %p3191_p2 = pnand %p3190_p1, %p3184_p9 }
  0x67   : > { %3194 = shalt.err (!%p3191_p2)
}
  0x68   : > { %2909 = dma.hbm_to_vmem [thread:$0]  (!%p3397_p11), %s3856_s4, 16, %s215_s7, [#allocation10]  }
  0x69   : > { %s3502_s14 = sadd.s32 1, %s3299_s21   ;;  %s30_s30 = sadd.s32 1, %s3295_s20 }
  0x6a   : > { %s27_s29 = ssub.s32 %s3299_s21, %s3502_s14  ;;  %p37_p13 = scmp.ne.s32.totalorder %s3295_s20, %s3291_s19 }
  0x6b   : > { %p28_p4 = scmp.eq.s32.totalorder %s27_s29, 0  ;;  %p38_p8 = scmp.eq.s32.totalorder %s3299_s21, 0 }
  0x6c   : > { %p3867_p6 = scmp.eq.s32.totalorder %s3367_s22, 1  ;;  %p2922_p3 = scmp.lt.s32.totalorder %s3299_s21, 2 }
  0x6d   : > { %s3518_s10 = scalar_select %p28_p4, %s3295_s20, %s30_s30  }
  0x6e   : > { %p3512_p10 = por %p3867_p6, %p37_p13  ;;  %p39_p5 = por %p38_p8, %p37_p13 }
  0x6f   : > { %s225_s11 = sand.u32 1, %s3295_s20   ;;  %s2875_s7 = smul.u32 192, %s3299_s21 }
  0x70   : > { %s2874_s12 = smul.u32 12, %s225_s11  ;;  %p3522_p11 = pnand %p2922_p3, %p39_p5 }
  0x71   : > { %s3529_s8 = scalar_lea.hbm %s3852_s0, %s2875_s7  ;;  %s3533_s17 = scalar_lea.sflag [#allocation4], %s225_s11 }
  0x72   : > { %s229_s28 = scalar_lea.vmem [#allocation3], %s2874_s12  ;;  %s3195_s30 = scalar_lea.hbm %s3529_s8, 192 }
  0x73   : > { %s236_s6 = sshll.u32 %s229_s28, 4  ;;  %p3196_p7 = scmp.ne.s32.totalorder %s3529_s8, %s3195_s30  ;;  %s3531_s6 = int_to_ptr.vmem [resolvable:$true] %s236_s6 }
  0x74   : > { %p3197_p9 = pneg %p3522_p11  ;;  %s3200_s15 = scalar_lea.hbm %s3852_s0, 384 }
  0x75   : > { %p3201_p1 = scmp.lt.u32.totalorder %s3529_s8, %s3852_s0  ;;  %p3202_p2 = scmp.lt.u32.totalorder %s3200_s15, %s3195_s30 }
  0x76   : > { %p3198_p12 = pnand %p3197_p9, %p3196_p7  ;;  %p3204_p4 = scmp.lt.u32.totalorder %s3195_s30, %s3529_s8 }
  0x77   : > { %p3203_p13 = por %p3202_p2, %p3201_p1 }
  0x78   : > { %p3199_p0 = pneg %p3198_p12 }
  0x79   : > { %p3205_p8 = por %p3204_p4, %p3203_p13 }
  0x7b   : > { %p3206_p6 = pnand %p3205_p8, %p3199_p0 }
  0x7d   : > { %3209 = shalt.err (!%p3206_p6)
}
  0x7e   : > { %s3210_s11 = scalar_lea.vmem %s3531_s6, 192  ;;  %s3307_s12 = smov [#allocation3]  }
  0x7f   : > { %p3211_p3 = scmp.ne.s32.totalorder %s3531_s6, %s3210_s11  ;;  %s3215_s28 = sshll.u32 %s3307_s12, 4  ;;  %s3216_s28 = int_to_ptr.vmem [resolvable:$false] %s3215_s28 }
  0x80   : > { %s3217_s23 = scalar_lea.vmem %s3216_s28, 384  ;;  %p3218_p12 = scmp.lt.s32.totalorder %s3531_s6, %s3216_s28 }
  0x81   : > { %p3213_p5 = pnand %p3211_p3, %p3197_p9  ;;  %p3219_p1 = scmp.lt.s32.totalorder %s3217_s23, %s3210_s11 }
  0x83   : > { %p3214_p7 = pneg %p3213_p5  ;;  %p3220_p2 = por %p3219_p1, %p3218_p12 }
  0x85   : > { %p3221_p13 = pnand %p3220_p2, %p3214_p7 }
  0x87   : > { %3224 = shalt.err (!%p3221_p13)
}
  0x88   : > { %s3870_s30 = smov 64   ;;  %p3871_p9 = scmp.ne.s32.totalorder %s3864_s26, 0 }
  0x89   : > { %2913 = dma.hbm_to_vmem [thread:$0]  (!%p3522_p11), %s3529_s8, 192, %s3531_s6, %s3533_s17, %s3870_s30, %s3870_s30, %s3305_s27  }
  0x8a   : > { %248 = sbr.rel (%p3871_p9) target bundleno = 1160 (0x488), region = 40  ;;  %s3567_s29 = sand.u32 (!%p3871_p9), 1, %s3291_s19  }
  0x8b   : > { %s2876_s7 = smul.u32 (!%p3871_p9), 12, %s3567_s29  ;;  %s251_s15 = scalar_lea.sflag (!%p3871_p9), [#allocation4], %s3567_s29 }
  0x8c   : > { %p3872_p0 = scmp.ne.s32.totalorder (!%p3871_p9), %s3862_s24, 0 }
  0x8d   : > { %s254_s16 = scalar_lea.vmem (!%p3871_p9), [#allocation3], %s2876_s7 }
  0x91   : > { %3270 = dma.done.wait (%p3872_p0), %s251_s15, 192  }
  0x92   : > { %3272 = vsyncadd (%p3872_p0), %s251_s15, 4294967104  ;;  %p3873_p4 = scmp.eq.s32.totalorder %s3367_s22, 0 }
  0x94   : > { %3274 = dma.done.wait (%p3873_p4), [#allocation7], 13824   ;;  %p3874_p11 = pmov %p3873_p4 }
  0x95   : > { %p3875_p8 = pmov %p3873_p4 }
  0x96   : > { %3276 = vsyncadd (%p3874_p11), [#allocation7], 4294953472 }
  0x97   : > { %3278 = dma.done.wait (%p3875_p8), [#allocation10], 32   ;;  %p3876_p6 = pmov %p3873_p4 }
  0x98   : > { %v3308_v0 = vmov 0.0   ;;  %vm3309_vm0 = vmmov 0   ;;  %vm555_vm1 = vsmask.f32 7424  ;;  %v2973_v1 = vld [vmem:[%s254_s16] sm:$0xff]   ;;  %vm808_vm2 = vcmask 1046528  }
  0x99   : > { %3280 = vsyncadd (%p3876_p6), [#allocation10], 4294967264  ;;  %2586 = vmatprep.subr.bf16.mxu0 %v3308_v0  ;;  %1053 = vst [vmem:[#allocation2] sm:$0xff] %v3308_v0  ;;  %2598 = vmatprep.subr.bf16.mxu1 %v3308_v0  ;;  %v2974_v2 = vld [vmem:[%s254_s16 + $0x8] ss:$0 sps:$4 sm:$0x11]  }
  0x9a   : > { %1056 = vst [vmem:[#allocation2 + $0x10] sm:$0xff] %v3308_v0  ;;  %1058 = vst [vmem:[#allocation2 + $0x20] sm:$0x3] %v3308_v0  ;;  %2594 = vmatprep.mubr.msk.bf16.mxu0 %vm3309_vm0, %v3308_v0  ;;  %2606 = vmatprep.mubr.msk.bf16.mxu1 %vm3309_vm0, %v3308_v0  ;;  %v2975_v3 = vld [vmem:[#allocation6 + $0x20] sm:$0xff]   ;;  %s3310_s24 = smov 124   ;;  %v556_v4 = vshrl.u32 %v2973_v1, 16 }
  0x9b   : > { %323 = vrot.lane.b32.xlu0 %v2973_v1, %s3310_s24  ;;  %v558_v5 = vshll.u32 %v2973_v1, 16  ;;  %v809_v6 = vrot.slane %v2973_v1, 1  ;;  %v2976_v7 = vld [vmem:[#allocation6] sm:$0xff]   ;;  %v563_v8 = vshll.u32 %v2974_v2, 16  ;;  %v810_v9 = vrot.slane %v2974_v2, 1  ;;  %2587 = vmatpush3.bf16.msra.mxu0 %v2975_v3  ;;  %v2977_v11 = vld [vmem:[#allocation6 + $0x28] sm:$0xff]  }
  0x9c   : > { %2599 = vmatpush3.bf16.msra.mxu1 %v2976_v7  ;;  %2588 = vmatprep.subr.bf16.mxu0 %v3308_v0  ;;  %v2978_v13 = vld [vmem:[#allocation6 + $0x8] sm:$0xff]   ;;  %s3311_s26 = smov 120   ;;  %v2979_v16 = vld [vmem:[#allocation6 + $0x30] sm:$0xff]   ;;  %v2981_v19 = vld [vmem:[#allocation6 + $0x38] sm:$0xff]   ;;  %vm349_vm3 = vcmask 523264   ;;  %vm1054_vm4 = vcmask 130048  }
  0x9d   : > { %v560_v10 = vrot.slane %v558_v5, 1  ;;  %v565_v12 = vrot.slane %v563_v8, 1  ;;  %2600 = vmatprep.subr.bf16.mxu1 %v3308_v0  ;;  %v3596_v15 = vsel %vm808_vm2, %v809_v6, %v810_v9  ;;  %v2980_v18 = vld [vmem:[#allocation6 + $0x10] sm:$0xff]   ;;  %v2982_v20 = vld [vmem:[#allocation6 + $0x18] sm:$0xff]   ;;  %v2984_v21 = vld [vmem:[#allocation6 + $0x60] sm:$0xff]   ;;  %1055 = vst.msk [vmem:[#allocation2 + $0x8] sm:$0xff] %vm1054_vm4, %v3308_v0 }
  0x9e   : > { %v2986_v22 = vld [vmem:[#allocation6 + $0x68] sm:$0xff]   ;;  %v2988_v23 = vld [vmem:[#allocation6 + $0x70] sm:$0xff]   ;;  %v2990_v24 = vld [vmem:[#allocation6 + $0x78] sm:$0xff]   ;;  %1057 = vst.msk [vmem:[#allocation2 + $0x18] sm:$0xff] %vm1054_vm4, %v3308_v0  ;;  %vm1059_vm5 = vcmask 123904   ;;  %vm1063_vm6 = vcmask 1040384  }
  0x9f   : > { %471 = vrot.lane.b32.xlu0 %v2973_v1, %s3311_s26  ;;  %v561_v14 = vor.u32 %v560_v10, %v556_v4  ;;  %2589 = vmatpush3.bf16.msra.mxu0 %v2977_v11  ;;  %v2992_v25 = vld [vmem:[#allocation6 + $0xa0] sm:$0xff]   ;;  %v2994_v26 = vld [vmem:[#allocation6 + $0xa8] sm:$0xff]   ;;  %v2996_v27 = vld [vmem:[#allocation6 + $0xb0] sm:$0xff]   ;;  %1060 = vst.msk [vmem:[#allocation2 + $0x28] sm:$0x3] %vm1059_vm5, %v3308_v0  ;;  %s3312_s27 = smov 8  }
  0xa0   : > { %2601 = vmatpush3.bf16.msra.mxu1 %v2978_v13  ;;  %2590 = vmatprep.subr.bf16.mxu0 %v3308_v0  ;;  %v2998_v28 = vld [vmem:[#allocation6 + $0xb8] sm:$0xff]   ;;  %v2983_v29 = vld [vmem:[#allocation6 + $0x40] sm:$0xff]   ;;  %v2985_v31 = vld [vmem:[#allocation6 + $0x48] sm:$0xff]   ;;  %vm1076_vm7 = vcmask 1047617   ;;  %vm1078_vm8 = vcmask 64513   ;;  %vm1080_vm9 = vcmask 1047616  }
  0xa1   : > { %v566_v17 = vsel %vm555_vm1, %v561_v14, %v565_v12  ;;  %2602 = vmatprep.subr.bf16.mxu1 %v3308_v0  ;;  %v2987_v32 = vld [vmem:[#allocation6 + $0x50] sm:$0xff]   ;;  %v3000_v34 = vld [vmem:[#allocation6 + $0xe0] sm:$0xff]   ;;  %v2989_v35 = vld [vmem:[#allocation6 + $0x58] sm:$0xff]   ;;  %vm1082_vm10 = vcmask 64512   ;;  %vm1084_vm11 = vcmask 1040448   ;;  %vm1086_vm12 = vcmask 57344  }
  0xa2   : > { %646 = vrot.lane.b32.xlu1 %v566_v17, %s3310_s24  ;;  %v3002_v37 = vld [vmem:[#allocation6 + $0xe8] sm:$0xff]   ;;  %v2991_v39 = vld [vmem:[#allocation6 + $0x80] sm:$0xff]   ;;  %v3004_v40 = vld [vmem:[#allocation6 + $0xf0] sm:$0xff]   ;;  %s3313_s13 = smov 112   ;;  %vm1133_vm13 = vcmask 982016   ;;  %vm1335_vm14 = vcmask 916480  }
  0xa3   : > { %891 = vrot.lane.b32.xlu0 %v3596_v15, %s3310_s24  ;;  %2591 = vmatpush3.bf16.msra.mxu0 %v2979_v16  ;;  %v2993_v41 = vld [vmem:[#allocation6 + $0x88] sm:$0xff]   ;;  %v3006_v42 = vld [vmem:[#allocation6 + $0xf8] sm:$0xff]   ;;  %v2995_v43 = vld [vmem:[#allocation6 + $0x90] sm:$0xff]   ;;  %s2332_s8 = sshll.u32 %s3567_s29, 4  ;;  %s2459_s11 = sshll.u32 %s3367_s22, 8 }
  0xa4   : > { %2603 = vmatpush3.bf16.msra.mxu1 %v2980_v18  ;;  %2592 = vmatprep.subr.bf16.mxu0 %v3308_v0  ;;  %v2997_v45 = vld [vmem:[#allocation6 + $0x98] sm:$0xff]   ;;  %v2999_v46 = vld [vmem:[#allocation6 + $0xc0] sm:$0xff]   ;;  %v3001_v47 = vld [vmem:[#allocation6 + $0xc8] sm:$0xff]   ;;  %s296_s6 = scalar_lea.vmem [#allocation12], %s2332_s8  ;;  %s3807_s23 = scalar_lea.hbm %s3857_s5, %s2459_s11 }
  0xa5   : > { %2604 = vmatprep.subr.bf16.mxu1 %v3308_v0  ;;  %v3003_v48 = vld [vmem:[#allocation6 + $0xd0] sm:$0xff]   ;;  %v3005_v49 = vld [vmem:[#allocation6 + $0xd8] sm:$0xff]   ;;  %v3007_v50 = vld [vmem:[#allocation6 + $0x100] sm:$0xff]   ;;  %s2208_s17 = sshll.u32 %s296_s6, 4  ;;  %s2195_s30 = scalar_lea.sflag [#allocation5], %s3567_s29  ;;  %s3801_s17 = int_to_ptr.vmem [resolvable:$true] %s2208_s17 }
  0xa6   : > { %727 = vrot.lane.b32.xlu1 %v566_v17, %s3311_s26  ;;  %v3008_v51 = vld [vmem:[#allocation6 + $0x108] sm:$0xff]   ;;  %v3009_v52 = vld [vmem:[#allocation6 + $0x110] sm:$0xff]   ;;  %v3010_v53 = vld [vmem:[#allocation6 + $0x118] sm:$0xff]   ;;  %s3225_s7 = scalar_lea.vmem %s3801_s17, 256  ;;  %s3314_s22 = smov [#allocation12]  }
  0xa7   : > { %2593 = vmatpush3.bf16.msra.mxu0 %v2981_v19  ;;  %v3011_v63 = vld [vmem:[#allocation8] sm:$0xff]   ;;  %v3013_v2 = vld [vmem:[#allocation8 + $0x10] sm:$0xff]   ;;  %v3014_v3 = vld [vmem:[#allocation8 + $0x18] sm:$0xff]   ;;  %p3226_p3 = scmp.ne.s32.totalorder %s3801_s17, %s3225_s7  ;;  %s3229_s15 = sshll.u32 %s3314_s22, 4  ;;  %s3230_s15 = int_to_ptr.vmem [resolvable:$false] %s3229_s15 }
  0xa8   : > { %2605 = vmatpush3.bf16.msra.mxu1 %v2982_v20  ;;  %2610 = vmatprep.subr.bf16.mxu0 %v3308_v0  ;;  %v3015_v4 = vld [vmem:[#allocation8 + $0x20] sm:$0xff]   ;;  %s3231_s16 = scalar_lea.vmem %s3230_s15, 512  ;;  %p3232_p12 = scmp.lt.s32.totalorder %s3801_s17, %s3230_s15 }
  0xa9   : > { %2622 = vmatprep.subr.bf16.mxu1 %v3308_v0  ;;  %p3227_p5 = pnand %p3226_p3, %p3512_p10  ;;  %p3233_p1 = scmp.lt.s32.totalorder %s3231_s16, %s3225_s7 }
  0xaa   : > { %972 = vrot.lane.b32.xlu1 %v3596_v15, %s3311_s26 }
  0xab   : > { %2607 = vmatmul.mubr.msk.bf16.vlgmr.msra.gmra.mrb[0].mxu1 %vm349_vm3, %v2973_v1  ;;  %v3012_v1 = vld [vmem:[#allocation8 + $0x8] sm:$0xff]   ;;  %p3228_p7 = pneg %p3227_p5  ;;  %p3234_p2 = por %p3233_p1, %p3232_p12 }
  0xac   : > { %2623 = vmatpush3.bf16.msra.mxu1 %v2984_v21  ;;  %2630 = vmatprep.mubr.msk.bf16.mxu1 %vm3309_vm0, %v3308_v0 }
  0xad   : > { %2624 = vmatprep.subr.bf16.mxu1 %v3308_v0  ;;  %p3235_p13 = pnand %p3234_p2, %p3228_p7 }
  0xb0   : > { %2625 = vmatpush3.bf16.msra.mxu1 %v2986_v22 }
  0xb1   : > { %2626 = vmatprep.subr.bf16.mxu1 %v3308_v0 }
  0xb4   : > { %2627 = vmatpush3.bf16.msra.mxu1 %v2988_v23 }
  0xb5   : > { %2628 = vmatprep.subr.bf16.mxu1 %v3308_v0 }
  0xb8   : > { %2629 = vmatpush3.bf16.msra.mxu1 %v2990_v24 }
  0xb9   : > { %2646 = vmatprep.subr.bf16.mxu1 %v3308_v0 }
  0xbb   : > { %2631 = vmatmul.mubr.msk.bf16.vlgmr.msra.gmra.mrb[4].mxu1 %vm349_vm3, %v566_v17 }
  0xbc   : > { %2647 = vmatpush3.bf16.msra.mxu1 %v2992_v25  ;;  %2654 = vmatprep.mubr.msk.bf16.mxu1 %vm3309_vm0, %v3308_v0 }
  0xbd   : > { %2648 = vmatprep.subr.bf16.mxu1 %v3308_v0 }
  0xc0   : > { %2649 = vmatpush3.bf16.msra.mxu1 %v2994_v26 }
  0xc1   : > { %2650 = vmatprep.subr.bf16.mxu1 %v3308_v0 }
  0xc4   : > { %2651 = vmatpush3.bf16.msra.mxu1 %v2996_v27 }
  0xc5   : > { %2652 = vmatprep.subr.bf16.mxu1 %v3308_v0 }
  0xc8   : > { %2653 = vmatpush3.bf16.msra.mxu1 %v2998_v28 }
  0xc9   : > { %2670 = vmatprep.subr.bf16.mxu1 %v3308_v0 }
 0x10d   : > { %v324_v30 = vpop.permute.xlu0 %323 }
 0x10e   : > { %2595 = vmatmul.mubr.msk.bf16.vlgmr.msra.gmra.mrb[0].mxu0 %vm349_vm3, %v324_v30 }
 0x10f   : > { %2611 = vmatpush3.bf16.msra.mxu0 %v2983_v29  ;;  %2618 = vmatprep.mubr.msk.bf16.mxu0 %vm3309_vm0, %v3308_v0 }
 0x110   : > { %2612 = vmatprep.subr.bf16.mxu0 %v3308_v0 }
 0x111   : > { %v472_v38 = vpop.permute.xlu0 %471 }
 0x113   : > { %2613 = vmatpush3.bf16.msra.mxu0 %v2985_v31 }
 0x114   : > { %2614 = vmatprep.subr.bf16.mxu0 %v3308_v0  ;;  %v647_v33 = vpop.permute.xlu1 %646 }
 0x115   : > { %v892_v44 = vpop.permute.xlu0 %891 }
 0x117   : > { %2615 = vmatpush3.bf16.msra.mxu0 %v2987_v32 }
 0x118   : > { %2616 = vmatprep.subr.bf16.mxu0 %v3308_v0  ;;  %v728_v36 = vpop.permute.xlu1 %727 }
 0x119   : > { %2655 = vmatmul.mubr.msk.bf16.vlgmr.msra.gmra.mrb[8].mxu1 %vm349_vm3, %v728_v36 }
 0x11a   : > { %2671 = vmatpush3.bf16.msra.mxu1 %v3000_v34  ;;  %2678 = vmatprep.mubr.msk.bf16.mxu1 %vm3309_vm0, %v3308_v0 }
 0x11b   : > { %2617 = vmatpush3.bf16.msra.mxu0 %v2989_v35  ;;  %2672 = vmatprep.subr.bf16.mxu1 %v3308_v0 }
 0x11c   : > { %2634 = vmatprep.subr.bf16.mxu0 %v3308_v0  ;;  %v973_v54 = vpop.permute.xlu1 %972 }
 0x11e   : > { %2619 = vmatmul.mubr.msk.bf16.vlgmr.msra.gmra.mrb[4].mxu0 %vm349_vm3, %v472_v38  ;;  %2673 = vmatpush3.bf16.msra.mxu1 %v3002_v37 }
 0x11f   : > { %2635 = vmatpush3.bf16.msra.mxu0 %v2991_v39  ;;  %2642 = vmatprep.mubr.msk.bf16.mxu0 %vm3309_vm0, %v3308_v0 }
 0x120   : > { %2636 = vmatprep.subr.bf16.mxu0 %v3308_v0  ;;  %2674 = vmatprep.subr.bf16.mxu1 %v3308_v0 }
 0x122   : > { %2675 = vmatpush3.bf16.msra.mxu1 %v3004_v40 }
 0x123   : > { %2637 = vmatpush3.bf16.msra.mxu0 %v2993_v41  ;;  %2676 = vmatprep.subr.bf16.mxu1 %v3308_v0 }
 0x124   : > { %2638 = vmatprep.subr.bf16.mxu0 %v3308_v0 }
 0x126   : > { %2677 = vmatpush3.bf16.msra.mxu1 %v3006_v42 }
 0x127   : > { %2639 = vmatpush3.bf16.msra.mxu0 %v2995_v43  ;;  %2694 = vmatprep.subr.bf16.mxu1 %v3308_v0  ;;  %v3016_v43 = vld [vmem:[#allocation8 + $0x28] sm:$0xff]  }
 0x128   : > { %2640 = vmatprep.subr.bf16.mxu0 %v3308_v0 }
 0x129   : > { %2679 = vmatmul.mubr.msk.bf16.vlgmr.msra.gmra.mrb[12].mxu1 %vm349_vm3, %v892_v44  ;;  %v3017_v44 = vld [vmem:[#allocation8 + $0x30] sm:$0xff]  }
 0x12a   : > { %2710 = vmatprep.mubr.msk.bf16.mxu1 %vm3309_vm0, %v3308_v0 }
 0x12b   : > { %2641 = vmatpush3.bf16.msra.mxu0 %v2997_v45  ;;  %v3018_v45 = vld [vmem:[#allocation8 + $0x38] sm:$0xff]  }
 0x12c   : > { %2658 = vmatprep.subr.bf16.mxu0 %v3308_v0 }
 0x12e   : > { %2643 = vmatmul.mubr.msk.bf16.vlgmr.msra.gmra.mrb[8].mxu0 %vm349_vm3, %v647_v33 }
 0x12f   : > { %2659 = vmatpush3.bf16.msra.mxu0 %v2999_v46  ;;  %2666 = vmatprep.mubr.msk.bf16.mxu0 %vm3309_vm0, %v3308_v0 }
 0x130   : > { %2660 = vmatprep.subr.bf16.mxu0 %v3308_v0 }
 0x133   : > { %2661 = vmatpush3.bf16.msra.mxu0 %v3001_v47  ;;  %v2380_v47 = vld [vmem:[#allocation9] ss:$0 sm:$0xff] }
 0x134   : > { %2662 = vmatprep.subr.bf16.mxu0 %v3308_v0 }
 0x137   : > { %2663 = vmatpush3.bf16.msra.mxu0 %v3003_v48 }
 0x138   : > { %2664 = vmatprep.subr.bf16.mxu0 %v3308_v0 }
 0x13b   : > { %2665 = vmatpush3.bf16.msra.mxu0 %v3005_v49 }
 0x13c   : > { %2682 = vmatprep.subr.bf16.mxu0 %v3308_v0 }
 0x13e   : > { %2667 = vmatmul.mubr.msk.bf16.vlgmr.msra.gmra.mrb[12].mxu0 %vm349_vm3, %v3596_v15 }
 0x13f   : > { %2683 = vmatpush3.bf16.msra.mxu0 %v3007_v50  ;;  %2690 = vmatprep.mubr.msk.bf16.mxu0 %vm3309_vm0, %v3308_v0 }
 0x140   : > { %2684 = vmatprep.subr.bf16.mxu0 %v3308_v0 }
 0x143   : > { %2685 = vmatpush3.bf16.msra.mxu0 %v3008_v51 }
 0x144   : > { %2686 = vmatprep.subr.bf16.mxu0 %v3308_v0 }
 0x147   : > { %2687 = vmatpush3.bf16.msra.mxu0 %v3009_v52 }
 0x148   : > { %2688 = vmatprep.subr.bf16.mxu0 %v3308_v0 }
 0x14b   : > { %2689 = vmatpush3.bf16.msra.mxu0 %v3010_v53 }
 0x14c   : > { %2714 = vmatprep.subr.bf16.mxu0 %v3308_v0 }
 0x14e   : > { %2691 = vmatmul.mubr.msk.bf16.vlgmr.msra.gmra.mrb[16].mxu0 %vm349_vm3, %v973_v54 }
 0x14f   : > { %2730 = vmatprep.mubr.msk.bf16.mxu0 %vm3309_vm0, %v3308_v0  ;;  %2715 = vmatpush3.bf16.msra.mxu0 %v3011_v63  ;;  %v3034_v63 = vld [vmem:[#allocation8 + $0x68] sm:$0xff]  }
 0x150   : > { %2716 = vmatprep.subr.bf16.mxu0 %v3308_v0 }
 0x153   : > { %2717 = vmatpush3.bf16.msra.mxu0 %v3012_v1  ;;  %v3036_v1 = vld [vmem:[#allocation8 + $0x70] sm:$0xff]  }
 0x154   : > { %2718 = vmatprep.subr.bf16.mxu0 %v3308_v0 }
 0x157   : > { %2719 = vmatpush3.bf16.msra.mxu0 %v3013_v2  ;;  %v3038_v2 = vld [vmem:[#allocation8 + $0x78] sm:$0xff]  }
 0x158   : > { %2720 = vmatprep.subr.bf16.mxu0 %v3308_v0 }
 0x15b   : > { %2721 = vmatpush3.bf16.msra.mxu0 %v3014_v3 }
 0x15c   : > { %2722 = vmatprep.subr.bf16.mxu0 %v3308_v0 }
 0x15f   : > { %2723 = vmatpush3.bf16.msra.mxu0 %v3015_v4 }
 0x160   : > { %2724 = vmatprep.subr.bf16.mxu0 %v3308_v0 }
 0x163   : > { %2725 = vmatpush3.bf16.msra.mxu0 %v3016_v43 }
 0x164   : > { %2726 = vmatprep.subr.bf16.mxu0 %v3308_v0 }
 0x167   : > { %2727 = vmatpush3.bf16.msra.mxu0 %v3017_v44 }
 0x168   : > { %2728 = vmatprep.subr.bf16.mxu0 %v3308_v0 }
 0x16b   : > { %2729 = vmatpush3.bf16.msra.mxu0 %v3018_v45  ;;  %v3022_v45 = vld [vmem:[#allocation8 + $0xd8] sm:$0xff]  }
 0x16c   : > { %2754 = vmatprep.subr.bf16.mxu0 %v3308_v0 }
 0x17e   : > { %v455_v55 = vpop.f32.mrb[0].mxu1 }
 0x17f   : > { %v2608_v56 = vpop.f32.mrb[1].mxu1 }
 0x180   : > { %v458_v57 = vpop.f32.mrb[2].mxu1 }
 0x181   : > { %v2609_v58 = vpop.f32.mrb[3].mxu1 }
 0x182   : > { %v3027_v58 = vld [vmem:[#allocation8 + $0x40] sm:$0xff]  }
 0x183   : > { %2695 = vmatpush3.bf16.msra.mxu1 %v3027_v58  ;;  %v3024_v58 = vld [vmem:[#allocation8 + $0xe8] sm:$0xff]  }
 0x184   : > { %2696 = vmatprep.subr.bf16.mxu1 %v3308_v0 }
 0x18e   : > { %v628_v59 = vpop.f32.mrb[4].mxu1 }
 0x18f   : > { %v2632_v60 = vpop.f32.mrb[5].mxu1 }
 0x190   : > { %v631_v61 = vpop.f32.mrb[6].mxu1  ;;  %v3029_v60 = vld [vmem:[#allocation8 + $0x50] sm:$0xff]  }
 0x191   : > { %v2633_v62 = vpop.f32.mrb[7].mxu1 }
 0x192   : > { %v3032_v62 = vld [vmem:[#allocation8 + $0x60] sm:$0xff]  }
 0x1e1   : > { %v387_v5 = vpop.f32.mrb[0].mxu0 }
 0x1e2   : > { %v456_v6 = vadd.f32 %v455_v55, %v387_v5  ;;  %v2596_v7 = vpop.f32.mrb[1].mxu0 }
 0x1e3   : > { %v390_v8 = vpop.f32.mrb[2].mxu0 }
 0x1e4   : > { %v459_v9 = vadd.f32 %v458_v57, %v390_v8  ;;  %v2597_v10 = vpop.f32.mrb[3].mxu0 }
 0x1ec   : > { %v790_v11 = vpop.f32.mrb[8].mxu1 }
 0x1ed   : > { %v2656_v12 = vpop.f32.mrb[9].mxu1 }
 0x1ee   : > { %v793_v13 = vpop.f32.mrb[10].mxu1 }
 0x1ef   : > { %v2657_v14 = vpop.f32.mrb[11].mxu1 }
 0x1f0   : > { %v3019_v14 = vld [vmem:[#allocation8 + $0xc0] sm:$0xff]  }
 0x1f1   : > { %v534_v15 = vpop.f32.mrb[4].mxu0 }
 0x1f2   : > { %v541_v16 = vadd.f32 %v534_v15, %v456_v6  ;;  %v2620_v17 = vpop.f32.mrb[5].mxu0 }
 0x1f3   : > { %v537_v18 = vpop.f32.mrb[6].mxu0 }
 0x1f4   : > { %v542_v19 = vadd.f32 %v537_v18, %v459_v9  ;;  %v635_v20 = vadd.f32 %v628_v59, %v541_v16  ;;  %v2621_v21 = vpop.f32.mrb[7].mxu0  ;;  %v3028_v59 = vld [vmem:[#allocation8 + $0x48] sm:$0xff]  }
 0x1f5   : > { %2697 = vmatpush3.bf16.msra.mxu1 %v3028_v59 }
 0x1f6   : > { %v636_v22 = vadd.f32 %v631_v61, %v542_v19  ;;  %2698 = vmatprep.subr.bf16.mxu1 %v3308_v0  ;;  %v3030_v61 = vld [vmem:[#allocation8 + $0x58] sm:$0xff]  }
 0x1f9   : > { %2699 = vmatpush3.bf16.msra.mxu1 %v3029_v60 }
 0x1fa   : > { %2700 = vmatprep.subr.bf16.mxu1 %v3308_v0 }
 0x1fc   : > { %v954_v23 = vpop.f32.mrb[12].mxu1 }
 0x1fd   : > { %v2680_v24 = vpop.f32.mrb[13].mxu1  ;;  %2701 = vmatpush3.bf16.msra.mxu1 %v3030_v61  ;;  %v3025_v61 = vld [vmem:[#allocation8 + $0xf0] sm:$0xff]  }
 0x1fe   : > { %v957_v25 = vpop.f32.mrb[14].mxu1  ;;  %2702 = vmatprep.subr.bf16.mxu1 %v3308_v0 }
 0x1ff   : > { %v2681_v26 = vpop.f32.mrb[15].mxu1 }
 0x201   : > { %v709_v27 = vpop.f32.mrb[8].mxu0  ;;  %2703 = vmatpush3.bf16.msra.mxu1 %v3032_v62 }
 0x202   : > { %v716_v28 = vadd.f32 %v709_v27, %v635_v20  ;;  %v2644_v29 = vpop.f32.mrb[9].mxu0  ;;  %2704 = vmatprep.subr.bf16.mxu1 %v3308_v0 }
 0x203   : > { %v712_v30 = vpop.f32.mrb[10].mxu0 }
 0x204   : > { %v717_v31 = vadd.f32 %v712_v30, %v636_v22  ;;  %v797_v32 = vadd.f32 %v790_v11, %v716_v28  ;;  %v2645_v33 = vpop.f32.mrb[11].mxu0 }
 0x205   : > { %2705 = vmatpush3.bf16.msra.mxu1 %v3034_v63 }
 0x206   : > { %v798_v34 = vadd.f32 %v793_v13, %v717_v31  ;;  %2706 = vmatprep.subr.bf16.mxu1 %v3308_v0 }
 0x209   : > { %2707 = vmatpush3.bf16.msra.mxu1 %v3036_v1  ;;  %v3026_v1 = vld [vmem:[#allocation8 + $0xf8] sm:$0xff]  }
 0x20a   : > { %2708 = vmatprep.subr.bf16.mxu1 %v3308_v0 }
 0x20d   : > { %2709 = vmatpush3.bf16.msra.mxu1 %v3038_v2 }
 0x20e   : > { %2734 = vmatprep.subr.bf16.mxu1 %v3308_v0 }
 0x211   : > { %v873_v35 = vpop.f32.mrb[12].mxu0 }
 0x212   : > { %v880_v36 = vadd.f32 %v873_v35, %v797_v32  ;;  %v2668_v37 = vpop.f32.mrb[13].mxu0 }
 0x213   : > { %v876_v38 = vpop.f32.mrb[14].mxu0 }
 0x214   : > { %v881_v39 = vadd.f32 %v876_v38, %v798_v34  ;;  %v961_v40 = vadd.f32 %v954_v23, %v880_v36  ;;  %v2669_v41 = vpop.f32.mrb[15].mxu0  ;;  %v3021_v38 = vld [vmem:[#allocation8 + $0xd0] sm:$0xff]  }
 0x216   : > { %v962_v42 = vadd.f32 %v957_v25, %v881_v39  ;;  %v3020_v25 = vld [vmem:[#allocation8 + $0xc8] sm:$0xff]  }
 0x221   : > { %v1035_v46 = vpop.f32.mrb[16].mxu0 }
 0x222   : > { %v1042_v48 = vadd.f32 %v1035_v46, %v961_v40  ;;  %v2692_v49 = vpop.f32.mrb[17].mxu0 }
 0x223   : > { %v1038_v50 = vpop.f32.mrb[18].mxu0 }
 0x224   : > { %v3675_v51 = vadd.f32 %v2380_v47, %v1042_v48  ;;  %v1043_v52 = vadd.f32 %v1038_v50, %v962_v42  ;;  %v2693_v53 = vpop.f32.mrb[19].mxu0  ;;  %v3023_v50 = vld [vmem:[#allocation8 + $0xe0] sm:$0xff]  }
 0x226   : > { %v3678_v54 = vadd.f32 %v2380_v47, %v1043_v52  ;;  %v1064_v55 = vrot.slane %v3675_v51, 7 }
 0x228   : > { %v1065_v56 = vrot.slane %v3678_v54, 7  ;;  %1067 = vrot.lane.b32.xlu0 %v1064_v55, %s3312_s27 }
 0x22a   : > { %v1066_v57 = vsel %vm1063_vm6, %v1064_v55, %v1065_v56 }
 0x22b   : > { %1069 = vrot.lane.b32.xlu1 %v1066_v57, %s3312_s27 }
 0x22c   : > { %1071 = vrot.lane.b32.xlu0 %v1065_v56, %s3312_s27 }
 0x29a   : > { %v1068_v3 = vpop.permute.xlu0 %1067 }
 0x29b   : > { %1077 = vst.msk [vmem:[#allocation2] sm:$0xfe] %vm1076_vm7, %v1068_v3 }
 0x29c   : > { %1079 = vst.msk [vmem:[#allocation2 + $0x8] sm:$0xfe] %vm1078_vm8, %v1068_v3 }
 0x29d   : > { %v1070_v4 = vpop.permute.xlu1 %1069 }
 0x29e   : > { %1081 = vst.msk [vmem:[#allocation2 + $0x10] sm:$0xff] %vm1080_vm9, %v1070_v4  ;;  %v1072_v5 = vpop.permute.xlu0 %1071 }
 0x29f   : > { %1083 = vst.msk [vmem:[#allocation2 + $0x18] sm:$0xff] %vm1082_vm10, %v1070_v4 }
 0x2a0   : > { %1085 = vst.msk [vmem:[#allocation2 + $0x20] sm:$0x1] %vm1084_vm11, %v1072_v5 }
 0x2a1   : > { %1087 = vst.msk [vmem:[#allocation2 + $0x28] sm:$0x1] %vm1086_vm12, %v1072_v5  ;;  %v3031_v5 = vld [vmem:[#allocation8 + $0x140] sm:$0xff]  }
 0x2a2   : > { %v1088_v7 = vld [vmem:[#allocation2] sm:$0xff] }
 0x2a3   : > { %v1107_v6 = vld [vmem:[#allocation2 + $0x8] sm:$0xff]  ;;  %v1555_v11 = vld [vmem:[#allocation2] sm:$0xfe] }
 0x2a4   : > { %v1556_v8 = vld [vmem:[#allocation2 + $0x8] sm:$0xfe]  ;;  %v1935_v40 = vld [vmem:[#allocation2] sm:$0xfc] }
 0x2a5   : > { %v3693_v10 = vld [vmem:[#allocation2 + $0x10] sm:$0xff]  ;;  %v1936_v39 = vld [vmem:[#allocation2 + $0x8] sm:$0xfc]  ;;  %v1429_v55 = vld [vmem:[#allocation2] sm:$0xfe] }
 0x2a6   : > { %v1108_v9 = vld [vmem:[#allocation2 + $0x18] sm:$0xff]  ;;  %v1090_v13 = vpack.c.bf16 %v3693_v10, %v1088_v7  ;;  %v1561_v18 = vpack.c.bf16 %v3693_v10, %v1555_v11  ;;  %v1939_v43 = vpack.c.bf16 %v3693_v10, %v1935_v40  ;;  %v1432_v56 = vpack.c.bf16 %v3693_v10, %v1429_v55  ;;  %v3033_v7 = vld [vmem:[#allocation8 + $0x148] sm:$0xff]   ;;  %v3039_v11 = vld [vmem:[#allocation8 + $0x160] sm:$0xff]  }
 0x2a7   : > { %v1109_v12 = vpack.c.bf16 %v1108_v9, %v1107_v6  ;;  %v1562_v16 = vpack.c.bf16 %v1108_v9, %v1556_v8  ;;  %v1559_v17 = vld [vmem:[#allocation2 + $0x20] sm:$0x1]  ;;  %v1940_v41 = vpack.c.bf16 %v1108_v9, %v1936_v39  ;;  %v3035_v8 = vld [vmem:[#allocation8 + $0x150] sm:$0xff]   ;;  %v3057_v39 = vld [vmem:[#allocation8 + $0x1e8] sm:$0xff]  }
 0x2a8   : > { %v1560_v15 = vld [vmem:[#allocation2 + $0x28] sm:$0x1]  ;;  %v1563_v20 = vpack.c.bf16 %v1559_v17, %v1559_v17  ;;  %1129 = vrot.lane.b32.xlu1 %v1090_v13, %s3311_s26  ;;  %v1585_v22 = vshll.u32 %v1561_v18, 16  ;;  %2731 = vmatmul.mubr.bf16.vlgmr.msra.gmra.mrb[20].mxu0 %v1090_v13  ;;  %v1583_v28 = vshrl.u32 %v1561_v18, 16  ;;  %v1937_v35 = vld [vmem:[#allocation2 + $0x20] sm:$0x3] }
 0x2a9   : > { %v1564_v19 = vpack.c.bf16 %v1560_v15, %v1560_v15  ;;  %1131 = vrot.lane.b32.xlu0 %v1109_v12, %s3311_s26  ;;  %v1597_v21 = vshll.u32 %v1562_v16, 16  ;;  %2755 = vmatpush3.bf16.msra.mxu0 %v3019_v14  ;;  %v1595_v26 = vshrl.u32 %v1562_v16, 16  ;;  %v1938_v34 = vld [vmem:[#allocation2 + $0x28] sm:$0x3]  ;;  %v1941_v44 = vpack.c.bf16 %v1937_v35, %v1937_v35  ;;  %v1431_v57 = vld [vmem:[#allocation2 + $0x20] sm:$0x1] }
 0x2aa   : > { %v1590_v24 = vshll.u32 %v1563_v20, 16  ;;  %v1587_v29 = vrot.slane %v1585_v22, 1  ;;  %2770 = vmatprep.mubr.msk.bf16.mxu0 %vm3309_vm0, %v3308_v0  ;;  %2756 = vmatprep.subr.bf16.mxu0 %v3308_v0  ;;  %v1942_v42 = vpack.c.bf16 %v1938_v34, %v1938_v34  ;;  %v1967_v46 = vrot.slane %v1940_v41, 1  ;;  %v3037_v9 = vld [vmem:[#allocation8 + $0x158] sm:$0xff]   ;;  %v3040_v15 = vld [vmem:[#allocation8 + $0x80] sm:$0xff]   ;;  %v3044_v22 = vld [vmem:[#allocation8 + $0x90] sm:$0xff]  }
 0x2ab   : > { %v1602_v23 = vshll.u32 %v1564_v19, 16  ;;  %v1599_v27 = vrot.slane %v1597_v21, 1  ;;  %v1964_v48 = vrot.slane %v1939_v43, 1  ;;  %v1965_v49 = vrot.slane %v1941_v44, 1  ;;  %v3045_v14 = vld [vmem:[#allocation8 + $0x178] sm:$0xff]   ;;  %v3042_v19 = vld [vmem:[#allocation8 + $0x88] sm:$0xff]  }
 0x2ac   : > { %v1592_v31 = vrot.slane %v1590_v24, 1  ;;  %1331 = vrot.lane.b32.xlu1 %v1090_v13, %s3313_s13  ;;  %v1588_v33 = vor.u32 %v1587_v29, %v1583_v28  ;;  %v1968_v47 = vrot.slane %v1942_v42, 1  ;;  %v1433_v59 = vpack.c.bf16 %v1431_v57, %v1431_v57  ;;  %v3043_v13 = vld [vmem:[#allocation8 + $0x170] sm:$0xff]   ;;  %v3053_v35 = vld [vmem:[#allocation8 + $0x1d8] sm:$0xff]   ;;  %v3058_v41 = vld [vmem:[#allocation8 + $0x108] sm:$0xff]  }
 0x2ad   : > { %v1604_v30 = vrot.slane %v1602_v23, 1  ;;  %1333 = vrot.lane.b32.xlu0 %v1109_v12, %s3313_s13  ;;  %v1600_v32 = vor.u32 %v1599_v27, %v1595_v26  ;;  %2757 = vmatpush3.bf16.msra.mxu0 %v3020_v25  ;;  %v1966_v53 = vsel %vm808_vm2, %v1964_v48, %v1965_v49  ;;  %v1454_v60 = vshll.u32 %v1432_v56, 16  ;;  %v3041_v12 = vld [vmem:[#allocation8 + $0x168] sm:$0xff]   ;;  %v3046_v25 = vld [vmem:[#allocation8 + $0x98] sm:$0xff]   ;;  %v3047_v26 = vld [vmem:[#allocation8 + $0x1c0] sm:$0xff]  }
 0x2ae   : > { %v1593_v37 = vsel %vm555_vm1, %v1588_v33, %v1592_v31  ;;  %2758 = vmatprep.subr.bf16.mxu0 %v3308_v0  ;;  %v1969_v52 = vsel %vm808_vm2, %v1967_v46, %v1968_v47  ;;  %v1459_v63 = vshll.u32 %v1433_v59, 16  ;;  %v1452_v2 = vshrl.u32 %v1432_v56, 16  ;;  %v3049_v31 = vld [vmem:[#allocation8 + $0x1c8] sm:$0xff]   ;;  %v3051_v33 = vld [vmem:[#allocation8 + $0x1d0] sm:$0xff]   ;;  %v3061_v44 = vld [vmem:[#allocation8 + $0x1f8] sm:$0xff]  }
 0x2af   : > { %v1605_v36 = vsel %vm555_vm1, %v1600_v32, %v1604_v30  ;;  %v1456_v62 = vrot.slane %v1454_v60, 1  ;;  %v3048_v30 = vld [vmem:[#allocation8 + $0xa0] sm:$0xff]   ;;  %v3050_v32 = vld [vmem:[#allocation8 + $0xa8] sm:$0xff]   ;;  %v3052_v34 = vld [vmem:[#allocation8 + $0xb0] sm:$0xff]  }
 0x2b0   : > { %1606 = vrot.lane.b32.xlu1 %v1593_v37, %s3311_s26  ;;  %v1461_v4 = vrot.slane %v1459_v63, 1  ;;  %v3059_v42 = vld [vmem:[#allocation8 + $0x1f0] sm:$0xff]   ;;  %v3062_v47 = vld [vmem:[#allocation8 + $0x118] sm:$0xff]   ;;  %v3063_v49 = vld [vmem:[#allocation8 + $0x120] sm:$0xff]  }
 0x2b1   : > { %1608 = vrot.lane.b32.xlu0 %v1605_v36, %s3311_s26  ;;  %2759 = vmatpush3.bf16.msra.mxu0 %v3021_v38  ;;  %v1457_v3 = vor.u32 %v1456_v62, %v1452_v2  ;;  %v3056_v38 = vld [vmem:[#allocation8 + $0x100] sm:$0xff]   ;;  %v3060_v43 = vld [vmem:[#allocation8 + $0x110] sm:$0xff]   ;;  %v3068_v57 = vld [vmem:[#allocation8 + $0x188] sm:$0xff]  }
 0x2b2   : > { %2760 = vmatprep.subr.bf16.mxu0 %v3308_v0  ;;  %v3067_v55 = vld [vmem:[#allocation8 + $0x180] sm:$0xff]   ;;  %v3070_v59 = vld [vmem:[#allocation8 + $0x198] sm:$0xff]   ;;  %v3073_v63 = vld [vmem:[#allocation8 + $0x1b0] sm:$0xff]  }
 0x2b3   : > { %v1462_v6 = vsel %vm555_vm1, %v1457_v3, %v1461_v4  ;;  %v3071_v60 = vld [vmem:[#allocation8 + $0x1a0] sm:$0xff]   ;;  %v1818_v62 = vld [vmem:[#allocation2 + $0x20] sm:$0x3] }
 0x2b4   : > { %1720 = vrot.lane.b32.xlu1 %v1593_v37, %s3313_s13  ;;  %v3055_v37 = vld [vmem:[#allocation8 + $0x1e0] sm:$0xff]   ;;  %v1820_v3 = vpack.c.bf16 %v1818_v62, %v1818_v62  ;;  %v3074_v4 = vld [vmem:[#allocation8 + $0x1b8] sm:$0xff]  }
 0x2b5   : > { %1722 = vrot.lane.b32.xlu0 %v1605_v36, %s3313_s13  ;;  %2761 = vmatpush3.bf16.msra.mxu0 %v3022_v45  ;;  %v3054_v36 = vld [vmem:[#allocation8 + $0xb8] sm:$0xff]  }
 0x2b6   : > { %2762 = vmatprep.subr.bf16.mxu0 %v3308_v0 }
 0x2b8   : > { %1970 = vrot.lane.b32.xlu1 %v1966_v53, %s3311_s26 }
 0x2b9   : > { %1972 = vrot.lane.b32.xlu0 %v1969_v52, %s3311_s26  ;;  %2763 = vmatpush3.bf16.msra.mxu0 %v3023_v50  ;;  %v3064_v50 = vld [vmem:[#allocation8 + $0x128] sm:$0xff]  }
 0x2ba   : > { %2764 = vmatprep.subr.bf16.mxu0 %v3308_v0 }
 0x2bc   : > { %2084 = vrot.lane.b32.xlu1 %v1966_v53, %s3313_s13  ;;  %v3066_v53 = vld [vmem:[#allocation8 + $0x138] sm:$0xff]  }
 0x2bd   : > { %2086 = vrot.lane.b32.xlu0 %v1969_v52, %s3313_s13  ;;  %2765 = vmatpush3.bf16.msra.mxu0 %v3024_v58  ;;  %v3065_v52 = vld [vmem:[#allocation8 + $0x130] sm:$0xff]  }
 0x2be   : > { %2766 = vmatprep.subr.bf16.mxu0 %v3308_v0  ;;  %v3069_v58 = vld [vmem:[#allocation8 + $0x190] sm:$0xff]  }
 0x2c1   : > { %2767 = vmatpush3.bf16.msra.mxu0 %v3025_v61  ;;  %v3072_v61 = vld [vmem:[#allocation8 + $0x1a8] sm:$0xff]  }
 0x2c2   : > { %2768 = vmatprep.subr.bf16.mxu0 %v3308_v0 }
 0x2c5   : > { %2769 = vmatpush3.bf16.msra.mxu0 %v3026_v1  ;;  %v1817_v1 = vld [vmem:[#allocation2] sm:$0xfc] }
 0x2c6   : > { %2794 = vmatprep.subr.bf16.mxu0 %v3308_v0  ;;  %v1819_v2 = vpack.c.bf16 %v3693_v10, %v1817_v1 }
 0x2c8   : > { %2771 = vmatmul.mubr.bf16.vlgmr.msra.gmra.mrb[24].mxu0 %v1462_v6  ;;  %v1841_v6 = vrot.slane %v1820_v3, 1 }
 0x2c9   : > { %2795 = vmatpush3.bf16.msra.mxu0 %v3031_v5  ;;  %2810 = vmatprep.mubr.msk.bf16.mxu0 %vm3309_vm0, %v3308_v0  ;;  %v1840_v5 = vrot.slane %v1819_v2, 1 }
 0x2ca   : > { %2796 = vmatprep.subr.bf16.mxu0 %v3308_v0 }
 0x2cd   : > { %2797 = vmatpush3.bf16.msra.mxu0 %v3033_v7  ;;  %v3075_v7 = vld [vmem:[#allocation8 + $0x200] sm:$0xff]  }
 0x2ce   : > { %2798 = vmatprep.subr.bf16.mxu0 %v3308_v0 }
 0x2d1   : > { %2799 = vmatpush3.bf16.msra.mxu0 %v3035_v8  ;;  %v1842_v8 = vsel %vm808_vm2, %v1840_v5, %v1841_v6 }
 0x2d2   : > { %2800 = vmatprep.subr.bf16.mxu0 %v3308_v0 }
 0x2d5   : > { %2801 = vmatpush3.bf16.msra.mxu0 %v3037_v9 }
 0x2d6   : > { %2802 = vmatprep.subr.bf16.mxu0 %v3308_v0 }
 0x2d9   : > { %2803 = vmatpush3.bf16.msra.mxu0 %v3039_v11 }
 0x2da   : > { %2804 = vmatprep.subr.bf16.mxu0 %v3308_v0 }
 0x2dd   : > { %2805 = vmatpush3.bf16.msra.mxu0 %v3041_v12  ;;  %v3076_v12 = vld [vmem:[#allocation8 + $0x208] sm:$0xff]  }
 0x2de   : > { %2806 = vmatprep.subr.bf16.mxu0 %v3308_v0 }
 0x2e1   : > { %2807 = vmatpush3.bf16.msra.mxu0 %v3043_v13 }
 0x2e2   : > { %2808 = vmatprep.subr.bf16.mxu0 %v3308_v0 }
 0x2e5   : > { %2809 = vmatpush3.bf16.msra.mxu0 %v3045_v14  ;;  %v3077_v14 = vld [vmem:[#allocation8 + $0x210] sm:$0xff]  }
 0x2e6   : > { %2834 = vmatprep.subr.bf16.mxu0 %v3308_v0 }
 0x31a   : > { %v1130_v17 = vpop.permute.xlu1 %1129 }
 0x31b   : > { %v1132_v16 = vpop.permute.xlu0 %1131 }
 0x31c   : > { %v1134_v18 = vsel %vm1133_vm13, %v1130_v17, %v1132_v16  ;;  %v3079_v16 = vld [vmem:[#allocation8 + $0x220] sm:$0xff]   ;;  %v3080_v17 = vld [vmem:[#allocation8 + $0x228] sm:$0xff]  }
 0x31d   : > { %2711 = vmatmul.mubr.bf16.vlgmr.msra.gmra.mrb[16].mxu1 %v1134_v18  ;;  %v3081_v18 = vld [vmem:[#allocation8 + $0x230] sm:$0xff]  }
 0x31e   : > { %2735 = vmatpush3.bf16.msra.mxu1 %v3040_v15  ;;  %2750 = vmatprep.mubr.msk.bf16.mxu1 %vm3309_vm0, %v3308_v0  ;;  %v1332_v21 = vpop.permute.xlu1 %1331  ;;  %v3078_v15 = vld [vmem:[#allocation8 + $0x218] sm:$0xff]  }
 0x31f   : > { %v1334_v20 = vpop.permute.xlu0 %1333  ;;  %2736 = vmatprep.subr.bf16.mxu1 %v3308_v0 }
 0x320   : > { %v1336_v40 = vsel %vm1335_vm14, %v1332_v21, %v1334_v20 }
 0x322   : > { %2737 = vmatpush3.bf16.msra.mxu1 %v3042_v19  ;;  %v3742_v24 = vpop.permute.xlu1 %1606  ;;  %v3082_v19 = vld [vmem:[#allocation8 + $0x238] sm:$0xff]  }
 0x323   : > { %v3740_v23 = vpop.permute.xlu0 %1608  ;;  %2738 = vmatprep.subr.bf16.mxu1 %v3308_v0 }
 0x324   : > { %v1610_v56 = vsel %vm1133_vm13, %v3742_v24, %v3740_v23 }
 0x326   : > { %2739 = vmatpush3.bf16.msra.mxu1 %v3044_v22  ;;  %v1721_v28 = vpop.permute.xlu1 %1720 }
 0x327   : > { %v1723_v27 = vpop.permute.xlu0 %1722  ;;  %2740 = vmatprep.subr.bf16.mxu1 %v3308_v0 }
 0x328   : > { %v1724_v29 = vsel %vm1335_vm14, %v1721_v28, %v1723_v27 }
 0x329   : > { %2811 = vmatmul.mubr.bf16.vlgmr.msra.gmra.mrb[28].mxu0 %v1724_v29 }
 0x32a   : > { %2741 = vmatpush3.bf16.msra.mxu1 %v3046_v25  ;;  %2835 = vmatpush3.bf16.msra.mxu0 %v3047_v26  ;;  %v1971_v46 = vpop.permute.xlu1 %1970 }
 0x32b   : > { %2742 = vmatprep.subr.bf16.mxu1 %v3308_v0  ;;  %2836 = vmatprep.subr.bf16.mxu0 %v3308_v0  ;;  %v1973_v45 = vpop.permute.xlu0 %1972 }
 0x32c   : > { %2850 = vmatprep.mubr.msk.bf16.mxu0 %vm3309_vm0, %v3308_v0  ;;  %v1974_v48 = vsel %vm1133_vm13, %v1971_v46, %v1973_v45 }
 0x32e   : > { %2743 = vmatpush3.bf16.msra.mxu1 %v3048_v30  ;;  %2837 = vmatpush3.bf16.msra.mxu0 %v3049_v31  ;;  %v2085_v21 = vpop.permute.xlu1 %2084 }
 0x32f   : > { %2744 = vmatprep.subr.bf16.mxu1 %v3308_v0  ;;  %2838 = vmatprep.subr.bf16.mxu0 %v3308_v0  ;;  %v2087_v20 = vpop.permute.xlu0 %2086 }
 0x330   : > { %v2088_v22 = vsel %vm1335_vm14, %v2085_v21, %v2087_v20 }
 0x332   : > { %2745 = vmatpush3.bf16.msra.mxu1 %v3050_v32  ;;  %2839 = vmatpush3.bf16.msra.mxu0 %v3051_v33 }
 0x333   : > { %2746 = vmatprep.subr.bf16.mxu1 %v3308_v0  ;;  %2840 = vmatprep.subr.bf16.mxu0 %v3308_v0 }
 0x336   : > { %2747 = vmatpush3.bf16.msra.mxu1 %v3052_v34  ;;  %2841 = vmatpush3.bf16.msra.mxu0 %v3053_v35 }
 0x337   : > { %2748 = vmatprep.subr.bf16.mxu1 %v3308_v0  ;;  %2842 = vmatprep.subr.bf16.mxu0 %v3308_v0 }
 0x33a   : > { %2749 = vmatpush3.bf16.msra.mxu1 %v3054_v36  ;;  %2843 = vmatpush3.bf16.msra.mxu0 %v3055_v37 }
 0x33b   : > { %2774 = vmatprep.subr.bf16.mxu1 %v3308_v0  ;;  %2844 = vmatprep.subr.bf16.mxu0 %v3308_v0 }
 0x33d   : > { %2751 = vmatmul.mubr.bf16.vlgmr.msra.gmra.mrb[20].mxu1 %v1336_v40 }
 0x33e   : > { %2775 = vmatpush3.bf16.msra.mxu1 %v3056_v38  ;;  %2845 = vmatpush3.bf16.msra.mxu0 %v3057_v39 }
 0x33f   : > { %2776 = vmatprep.subr.bf16.mxu1 %v3308_v0  ;;  %2846 = vmatprep.subr.bf16.mxu0 %v3308_v0 }
 0x340   : > { %2790 = vmatprep.mubr.msk.bf16.mxu1 %vm3309_vm0, %v3308_v0 }
 0x342   : > { %2777 = vmatpush3.bf16.msra.mxu1 %v3058_v41  ;;  %2847 = vmatpush3.bf16.msra.mxu0 %v3059_v42 }
 0x343   : > { %2778 = vmatprep.subr.bf16.mxu1 %v3308_v0  ;;  %2848 = vmatprep.subr.bf16.mxu0 %v3308_v0 }
 0x346   : > { %2779 = vmatpush3.bf16.msra.mxu1 %v3060_v43  ;;  %2849 = vmatpush3.bf16.msra.mxu0 %v3061_v44 }
 0x347   : > { %2780 = vmatprep.subr.bf16.mxu1 %v3308_v0 }
 0x349   : > { %2851 = vmatmul.mubr.bf16.vlgmr.msra.gmra.mrb[32].mxu0 %v1974_v48 }
 0x34a   : > { %2781 = vmatpush3.bf16.msra.mxu1 %v3062_v47 }
 0x34b   : > { %2782 = vmatprep.subr.bf16.mxu1 %v3308_v0 }
 0x34e   : > { %2783 = vmatpush3.bf16.msra.mxu1 %v3063_v49 }
 0x34f   : > { %2784 = vmatprep.subr.bf16.mxu1 %v3308_v0 }
 0x352   : > { %2785 = vmatpush3.bf16.msra.mxu1 %v3064_v50 }
 0x353   : > { %2786 = vmatprep.subr.bf16.mxu1 %v3308_v0 }
 0x356   : > { %2787 = vmatpush3.bf16.msra.mxu1 %v3065_v52 }
 0x357   : > { %2788 = vmatprep.subr.bf16.mxu1 %v3308_v0 }
 0x35a   : > { %2789 = vmatpush3.bf16.msra.mxu1 %v3066_v53 }
 0x35b   : > { %2814 = vmatprep.subr.bf16.mxu1 %v3308_v0 }
 0x35d   : > { %2791 = vmatmul.mubr.bf16.vlgmr.msra.gmra.mrb[24].mxu1 %v1610_v56 }
 0x35e   : > { %2815 = vmatpush3.bf16.msra.mxu1 %v3067_v55  ;;  %2830 = vmatprep.mubr.msk.bf16.mxu1 %vm3309_vm0, %v3308_v0 }
 0x35f   : > { %2816 = vmatprep.subr.bf16.mxu1 %v3308_v0 }
 0x362   : > { %2817 = vmatpush3.bf16.msra.mxu1 %v3068_v57 }
 0x363   : > { %2818 = vmatprep.subr.bf16.mxu1 %v3308_v0 }
 0x366   : > { %2819 = vmatpush3.bf16.msra.mxu1 %v3069_v58 }
 0x367   : > { %2820 = vmatprep.subr.bf16.mxu1 %v3308_v0 }
 0x36a   : > { %2821 = vmatpush3.bf16.msra.mxu1 %v3070_v59 }
 0x36b   : > { %2822 = vmatprep.subr.bf16.mxu1 %v3308_v0 }
 0x36e   : > { %2823 = vmatpush3.bf16.msra.mxu1 %v3071_v60 }
 0x36f   : > { %2824 = vmatprep.subr.bf16.mxu1 %v3308_v0 }
 0x372   : > { %2825 = vmatpush3.bf16.msra.mxu1 %v3072_v61 }
 0x373   : > { %2826 = vmatprep.subr.bf16.mxu1 %v3308_v0 }
 0x376   : > { %2827 = vmatpush3.bf16.msra.mxu1 %v3073_v63 }
 0x377   : > { %2828 = vmatprep.subr.bf16.mxu1 %v3308_v0 }
 0x37a   : > { %2829 = vmatpush3.bf16.msra.mxu1 %v3074_v4  ;;  %v2453_v4 = vld [vmem:[#allocation11] ss:$0 sm:$0xff] }
 0x37b   : > { %2854 = vmatprep.subr.bf16.mxu1 %v3308_v0  ;;  %v1307_v9 = vpop.f32.mrb[20].mxu0 }
 0x37c   : > { %v2732_v11 = vpop.f32.mrb[21].mxu0 }
 0x37d   : > { %2831 = vmatmul.mubr.bf16.vlgmr.msra.gmra.mrb[28].mxu1 %v1842_v8  ;;  %v1310_v10 = vpop.f32.mrb[22].mxu0 }
 0x37e   : > { %2855 = vmatpush3.bf16.msra.mxu1 %v3075_v7  ;;  %2870 = vmatprep.mubr.msk.bf16.mxu1 %vm3309_vm0, %v3308_v0  ;;  %v2733_v13 = vpop.f32.mrb[23].mxu0 }
 0x37f   : > { %2856 = vmatprep.subr.bf16.mxu1 %v3308_v0 }
 0x382   : > { %2857 = vmatpush3.bf16.msra.mxu1 %v3076_v12 }
 0x383   : > { %2858 = vmatprep.subr.bf16.mxu1 %v3308_v0 }
 0x386   : > { %2859 = vmatpush3.bf16.msra.mxu1 %v3077_v14 }
 0x387   : > { %2860 = vmatprep.subr.bf16.mxu1 %v3308_v0 }
 0x38a   : > { %2861 = vmatpush3.bf16.msra.mxu1 %v3078_v15 }
 0x38b   : > { %2862 = vmatprep.subr.bf16.mxu1 %v3308_v0 }
 0x38e   : > { %2863 = vmatpush3.bf16.msra.mxu1 %v3079_v16 }
 0x38f   : > { %2864 = vmatprep.subr.bf16.mxu1 %v3308_v0 }
 0x392   : > { %2865 = vmatpush3.bf16.msra.mxu1 %v3080_v17 }
 0x393   : > { %2866 = vmatprep.subr.bf16.mxu1 %v3308_v0 }
 0x396   : > { %2867 = vmatpush3.bf16.msra.mxu1 %v3081_v18 }
 0x397   : > { %2868 = vmatprep.subr.bf16.mxu1 %v3308_v0 }
 0x39a   : > { %2869 = vmatpush3.bf16.msra.mxu1 %v3082_v19 }
 0x39b   : > { %v1546_v23 = vpop.f32.mrb[24].mxu0 }
 0x39c   : > { %v2772_v24 = vpop.f32.mrb[25].mxu0 }
 0x39d   : > { %2871 = vmatmul.mubr.bf16.vlgmr.msra.gmra.mrb[32].mxu1 %v2088_v22  ;;  %v1549_v25 = vpop.f32.mrb[26].mxu0 }
 0x39e   : > { %v2773_v26 = vpop.f32.mrb[27].mxu0 }
 0x3f0   : > { %v1218_v27 = vpop.f32.mrb[16].mxu1 }
 0x3f1   : > { %v1308_v28 = vadd.f32 %v1307_v9, %v1218_v27  ;;  %v2712_v29 = vpop.f32.mrb[17].mxu1 }
 0x3f2   : > { %v1221_v30 = vpop.f32.mrb[18].mxu1 }
 0x3f3   : > { %v1311_v31 = vadd.f32 %v1310_v10, %v1221_v30  ;;  %v2713_v32 = vpop.f32.mrb[19].mxu1 }
 0x3fc   : > { %v1808_v33 = vpop.f32.mrb[28].mxu0 }
 0x3fd   : > { %v2812_v34 = vpop.f32.mrb[29].mxu0 }
 0x3fe   : > { %v1811_v35 = vpop.f32.mrb[30].mxu0 }
 0x3ff   : > { %v2813_v0 = vpop.f32.mrb[31].mxu0 }
 0x410   : > { %v1420_v36 = vpop.f32.mrb[20].mxu1 }
 0x411   : > { %v1427_v37 = vadd.f32 %v1420_v36, %v1308_v28  ;;  %v2752_v38 = vpop.f32.mrb[21].mxu1 }
 0x412   : > { %v1423_v39 = vpop.f32.mrb[22].mxu1 }
 0x413   : > { %v1428_v40 = vadd.f32 %v1423_v39, %v1311_v31  ;;  %v2753_v41 = vpop.f32.mrb[23].mxu1  ;;  %v1553_v42 = vadd.f32 %v1546_v23, %v1427_v37 }
 0x415   : > { %v1554_v43 = vadd.f32 %v1549_v25, %v1428_v40 }
 0x41c   : > { %v2058_v44 = vpop.f32.mrb[32].mxu0 }
 0x41d   : > { %v2852_v45 = vpop.f32.mrb[33].mxu0 }
 0x41e   : > { %v2061_v46 = vpop.f32.mrb[34].mxu0 }
 0x41f   : > { %v2853_v47 = vpop.f32.mrb[35].mxu0 }
 0x430   : > { %v1694_v48 = vpop.f32.mrb[24].mxu1 }
 0x431   : > { %v1701_v49 = vadd.f32 %v1694_v48, %v1553_v42  ;;  %v2792_v50 = vpop.f32.mrb[25].mxu1 }
 0x432   : > { %v1697_v52 = vpop.f32.mrb[26].mxu1 }
 0x433   : > { %v1702_v53 = vadd.f32 %v1697_v52, %v1554_v43  ;;  %v2793_v55 = vpop.f32.mrb[27].mxu1  ;;  %v1815_v56 = vadd.f32 %v1808_v33, %v1701_v49 }
 0x435   : > { %v1816_v57 = vadd.f32 %v1811_v35, %v1702_v53 }
 0x450   : > { %v1926_v58 = vpop.f32.mrb[28].mxu1 }
 0x451   : > { %v1933_v59 = vadd.f32 %v1926_v58, %v1815_v56  ;;  %v2832_v60 = vpop.f32.mrb[29].mxu1 }
 0x452   : > { %v1929_v61 = vpop.f32.mrb[30].mxu1 }
 0x453   : > { %v1934_v62 = vadd.f32 %v1929_v61, %v1816_v57  ;;  %v2833_v63 = vpop.f32.mrb[31].mxu1  ;;  %v2065_v1 = vadd.f32 %v2058_v44, %v1933_v59 }
 0x455   : > { %v2066_v2 = vadd.f32 %v2061_v46, %v1934_v62 }
 0x470   : > { %v2172_v3 = vpop.f32.mrb[32].mxu1 }
 0x471   : > { %v2179_v5 = vadd.f32 %v2172_v3, %v2065_v1  ;;  %v2872_v6 = vpop.f32.mrb[33].mxu1 }
 0x472   : > { %v2175_v7 = vpop.f32.mrb[34].mxu1 }
 0x473   : > { %v2188_v8 = vadd.f32 %v2453_v4, %v2179_v5  ;;  %v2180_v9 = vadd.f32 %v2175_v7, %v2066_v2  ;;  %v2873_v11 = vpop.f32.mrb[35].mxu1 }
 0x475   : > { %v2190_v12 = vadd.f32 %v2188_v8, %v3675_v51  ;;  %v2189_v10 = vadd.f32 %v2453_v4, %v2180_v9 }
 0x477   : > { %2192 = vst [vmem:[%s296_s6] sm:$0xff] %v2190_v12  ;;  %v2191_v13 = vadd.f32 %v2189_v10, %v3678_v54 }
 0x479   : > { %2193 = vst [vmem:[%s296_s6 + $0x8] sm:$0xff] %v2191_v13 }
 0x47a   : > { %3238 = shalt.err (!%p3235_p13)
}
 0x47b   : > { %s3239_s24 = scalar_lea.hbm %s3807_s23, 256  ;;  %s3243_s8 = scalar_lea.hbm %s3857_s5, 512 }
 0x47c   : > { %p3240_p9 = scmp.ne.s32.totalorder %s3807_s23, %s3239_s24  ;;  %p3244_p11 = scmp.lt.u32.totalorder %s3807_s23, %s3857_s5 }
 0x47d   : > { %p3245_p8 = scmp.lt.u32.totalorder %s3243_s8, %s3239_s24  ;;  %p3247_p3 = scmp.lt.u32.totalorder %s3239_s24, %s3807_s23 }
 0x47e   : > { %p3241_p0 = pnand %p3240_p9, %p3512_p10 }
 0x47f   : > { %p3246_p6 = por %p3245_p8, %p3244_p11 }
 0x480   : > { %p3242_p4 = pneg %p3241_p0 }
 0x481   : > { %p3248_p5 = por %p3247_p3, %p3246_p6 }
 0x483   : > { %p3249_p7 = pnand %p3248_p5, %p3242_p4 }
 0x485   : > { %3252 = shalt.err (!%p3249_p7)
}
 0x486   : > { %s3315_s12 = smov 128  }
 0x487   : > { %2895 = dma.vmem_to_hbm [thread:$0]  (%p3512_p10), %s3801_s17, 256, %s3807_s23, %s2195_s30, %s3315_s12, %s3315_s12, %s3312_s27  }
 0x488 PF: > { %s2223_s28 = sand.u32 1, %s3287_s18   ;;  %p3877_p12 = scmp.ne.s32.totalorder %s3863_s25, 0 }
 0x489   : > { %p3878_p1 = scmp.ge.s32.totalorder %s3299_s21, 2  ;;  %s2224_s7 = scalar_lea.sflag [#allocation5], %s2223_s28 }
 0x48b   : > { %p2915_p2 = pnand %p3878_p1, %p3877_p12 }
 0x48d   : > { %3282 = dma.done.wait (!%p2915_p2), %s2224_s7, 256  }
 0x48e   : > { %3284 = vsyncadd (!%p2915_p2), %s2224_s7, 4294967040  ;;  %p20_p13 = scmp.ge.s32.totalorder %s3502_s14, 4   ;;  %s3879_s18 = smov %s3291_s19 }
 0x48f   : > { %s3880_s19 = smov %s3295_s20  ;;  %s3881_s20 = smov %s3518_s10 }
 0x490   : > { %s3882_s21 = smov %s3502_s14  ;;  %22 = sbr.rel (!%p20_p13) target bundleno = 7 (0x7), region = 117 }
 0x497   :  { %2229 = vsyncpa [#allocation4], 1 }
 0x498   :  { %2231 = vsyncpa [#allocation4 + $0x1], 1 }
 0x499   :  { %2232 = vsyncpa [#allocation7], 1 }
 0x49a   :  { %2233 = vsyncpa [#allocation10], 1 }
 0x49b   :  { %2234 = vsyncpa [#allocation5], 1 }
 0x49c   :  { %2236 = vsyncpa [#allocation5 + $0x1], 1 }

</bundles_post_ra>
